<compile_context>
chip_gen: v5e
topology: v5e:2x2
jax: 0.10.0
libtpu: 0.0.40
codegen_flags: <defaults>
</compile_context>

<pallas_src>
import math

import numpy as np
import jax
import jax.numpy as jnp
from jax.experimental import pallas as pl
from jax.experimental.pallas import tpu as pltpu


# --------------------------------------------------------------------------- #
# Kernel body
# --------------------------------------------------------------------------- #
def _attn_fc_body(q_ref, k_ref, v_ref, w_ref, mask_ref, o_ref, merged_ref, *,
                  n_head, scale, mxu_dtype, approx_recip, prescaled,
                  fuse_fc_per_head):
    """One grid step: BB batch rows x all heads x fused output projection.

    q_ref : (BB, Lq, D)        k_ref / v_ref : (BB, Lk, D)
    w_ref : (D, D)  fc weight pre-transposed to (in, out)
    mask_ref : (BB, Lk) int32 or None
    o_ref : (BB, Lq, D)
    merged_ref : (BB, Lq, D) f32 VMEM scratch (None when fc is fused per head)
    """
    q = q_ref[...]
    if not prescaled:
        # Hoisted, full-width scale: f32 multiply then one cast to the MXU dtype.
        q = (q.astype(jnp.float32) * scale).astype(mxu_dtype)
    else:
        q = q.astype(mxu_dtype)                  # already scaled+cast in wrapper
    k = k_ref[...].astype(mxu_dtype)
    v = v_ref[...].astype(mxu_dtype)
    bb, lq, d_model = q.shape
    d_head = d_model // n_head
    rows = bb * lq

    if mask_ref is not None:
        # Hoisted: one compare+select for the whole step, re-used by every head.
        bias = jnp.where(mask_ref[...] != 0, jnp.float32(-1e9),
                         jnp.float32(0.0))[:, None, :]           # (BB, 1, Lk)

    acc = None
    for h in range(n_head):                      # static unroll; n_head small
        sl = slice(h * d_head, (h + 1) * d_head)
        # Q K^T with no explicit transpose (contract last dims); f32 scores.
        s = jnp.einsum('bqd,bkd->bqk', q[..., sl], k[..., sl],
                       preferred_element_type=jnp.float32)       # (BB, Lq, Lk)
        if mask_ref is not None:
            s = s + bias
        # Softmax stays in f32.
        s = s - jnp.max(s, axis=-1, keepdims=True)
        p = jnp.exp(s)
        p = p * pl.reciprocal(jnp.sum(p, axis=-1, keepdims=True),
                              approx=approx_recip)
        oh = jnp.einsum('bqk,bkd->bqd', p.astype(mxu_dtype), v[..., sl],
                        preferred_element_type=jnp.float32)      # (BB, Lq, dh)

        if fuse_fc_per_head:
            # (a) d_head >= 128: fuse fc into the head loop as an accumulation;
            # no concat, no scratch, head output dies immediately.
            contrib = jnp.einsum('bqd,de->bqe', oh.astype(mxu_dtype),
                                 w_ref[sl, :],
                                 preferred_element_type=jnp.float32)
            acc = contrib if acc is None else acc + contrib
        else:
            # (b) d_head < 128: write into the f32 VMEM slab at the head's lane
            # offset -- no lane-axis concatenate, no n_head-wide live set.
            merged_ref[:, :, sl] = oh

    if fuse_fc_per_head:
        o_ref[...] = acc.astype(o_ref.dtype)                     # lane-dense store
    else:
        # One full-K fc matmul; rows packed to BB*Lq so the MXU M dim is filled
        # even at small Lq (leading-dim merge/split is layout-free for Lq % 8 == 0).
        merged = merged_ref[...].reshape(rows, d_model).astype(mxu_dtype)
        y = jnp.dot(merged, w_ref[...], preferred_element_type=jnp.float32)
        o_ref[...] = y.reshape(bb, lq, d_model).astype(o_ref.dtype)


def _make_kernel(has_mask, use_slab, **kw):
    def kernel(*refs):
        q_ref, k_ref, v_ref, w_ref = refs[:4]
        idx = 4
        mask_ref = None
        if has_mask:
            mask_ref = refs[idx]
            idx += 1
        o_ref = refs[idx]
        idx += 1
        merged_ref = refs[idx] if use_slab else None
        _attn_fc_body(q_ref, k_ref, v_ref, w_ref, mask_ref, o_ref, merged_ref,
                      **kw)
    return kernel


# --------------------------------------------------------------------------- #
# Wrapper
# --------------------------------------------------------------------------- #
def _round_up(x, m):
    return (x + m - 1) // m * m


def _padded_block_bytes(shape, itemsize):
    dims = list(shape)
    dims[-1] = _round_up(dims[-1], 128)
    if len(dims) >= 2:
        dims[-2] = _round_up(dims[-2], 8)
    return int(np.prod(dims)) * itemsize


def _pick_batch_block(B, Lq, target_rows=512):
    """Largest divisor of B keeping BB*Lq rows per step <= target_rows."""
    bb = 1
    for d in range(1, B + 1):
        if B % d == 0 and d * Lq <= target_rows:
            bb = d
    return bb


def block_transformer(q, k, v, w_fc, n_head, mask=None, compute_dtype=None,
                      batch_block=None):
    """Forward pass of Block_transformer.

    q: (B, Lq, d_model), k/v: (B, Lk, d_model)
    w_fc: (d_model, d_model) torch nn.Linear weight layout (out, in)
    mask: optional (B, Lk); True/nonzero positions are masked out.
    compute_dtype: dtype fed to the MXU (e.g. jnp.bfloat16 on v6e/v7x).
      Softmax and all accumulation stay f32; output dtype matches q.dtype.
    """
    B, Lq, d_model = q.shape
    Lk = k.shape[1]
    assert d_model % n_head == 0, "d_model must be divisible by n_head"
    assert v.shape[1] == Lk, "len_k must equal len_v"
    d_head = d_model // n_head
    scale = d_head ** (-0.5)
    out_dtype = q.dtype

    compute_dtype = (np.dtype(compute_dtype) if compute_dtype is not None
                     else np.dtype(q.dtype))
    is_bf16 = compute_dtype == np.dtype(jnp.bfloat16)

    # Batch rows per grid step (amortize step overhead / fill MXU M at small Lq).
    BB = batch_block if batch_block is not None else _pick_batch_block(B, Lq)
    assert B % BB == 0, "batch_block must divide B"
    grid = (B // BB,)

    prescaled = compute_dtype != np.dtype(q.dtype)
    if prescaled:
        # Fold scale into the (already required) cast: f32 mul then convert,
        # fused by XLA -> no extra HBM pass and cleaner numerics than bf16 scaling.
        qc = (q * scale).astype(compute_dtype)
    else:
        qc = q
    kc = k.astype(compute_dtype)
    vc = v.astype(compute_dtype)
    w_t = w_fc.T.astype(compute_dtype)           # (in, out): plain NN matmul

    fuse_fc_per_head = d_head >= 128
    use_slab = not fuse_fc_per_head

    kernel = _make_kernel(mask is not None, use_slab,
                          n_head=n_head, scale=scale, mxu_dtype=compute_dtype,
                          approx_recip=is_bf16, prescaled=prescaled,
                          fuse_fc_per_head=fuse_fc_per_head)

    in_specs = [
        pl.BlockSpec((BB, Lq, d_model), lambda b: (b, 0, 0)),
        pl.BlockSpec((BB, Lk, d_model), lambda b: (b, 0, 0)),
        pl.BlockSpec((BB, Lk, d_model), lambda b: (b, 0, 0)),
    ]
    call_args = [qc, kc, vc, w_t]
    mask_specs = []
    if mask is not None:
        mask_specs.append(pl.BlockSpec((BB, Lk), lambda b: (b, 0)))
        call_args.append(mask.astype(jnp.int32))

    scratch_shapes = []
    if use_slab:
        scratch_shapes.append(pltpu.VMEM((BB, Lq, d_model), jnp.float32))

    # ---- explicit VMEM budget (per grid step), padded to (8,128) tiles -------
    cbytes = compute_dtype.itemsize
    obytes = np.dtype(out_dtype).itemsize
    need = 0
    need += 2 * _padded_block_bytes((BB, Lq, d_model), cbytes)       # q  (x2 buf)
    need += 2 * 2 * _padded_block_bytes((BB, Lk, d_model), cbytes)   # k,v (x2 buf)
    need += 2 * _padded_block_bytes((BB, Lq, d_model), obytes)       # out (x2 buf)
    need += 1 * _padded_block_bytes((d_model, d_model), cbytes)      # weight (x1)
    if mask is not None:
        need += 2 * _padded_block_bytes((BB, Lk), 4)
    if use_slab:
        need += _padded_block_bytes((BB, Lq, d_model), 4)            # merged slab
    need += 2 * _padded_block_bytes((BB, Lq, Lk), 4)                 # score/exp tmp
    vmem_limit = int(min(64 << 20, max(int(need * 1.5), 32 << 20)))  # v7x-safe cap

    def _weight_spec(single_buffer):
        if single_buffer:
            # Constant index_map -> never re-DMA'd; single-buffer it so the
            # resident d_model^2 weight does not take 2x VMEM.
            return pl.BlockSpec((d_model, d_model), lambda b: (0, 0),
                                pipeline_mode=pl.Buffered(1))
        return pl.BlockSpec((d_model, d_model), lambda b: (0, 0))

    def _build(single_buffer_weight):
        return pl.pallas_call(
            kernel,
            out_shape=jax.ShapeDtypeStruct((B, Lq, d_model), out_dtype),
            grid=grid,
            in_specs=in_specs + [_weight_spec(single_buffer_weight)] + mask_specs,
            out_specs=pl.BlockSpec((BB, Lq, d_model), lambda b: (b, 0, 0)),
            scratch_shapes=scratch_shapes,
            compiler_params=pltpu.CompilerParams(
                dimension_semantics=("parallel",),
                vmem_limit_bytes=vmem_limit,
            ),
        )

    try:
        return _build(True)(*call_args)
    except Exception:
        # This Pallas build rejected pipeline_mode=pl.Buffered(1); fall back to
        # the default (double-buffered) weight spec rather than failing to run.
        return _build(False)(*call_args)


# --------------------------------------------------------------------------- #
# Pure-JAX reference (mirrors the PyTorch module)
# --------------------------------------------------------------------------- #
def _reference(q, k, v, w_fc, n_head, mask=None):
    B, Lq, d_model = q.shape
    Lk = k.shape[1]
    d_head = d_model // n_head
    scale = d_head ** (-0.5)
    qh = q.reshape(B, Lq, n_head, d_head).transpose(0, 2, 1, 3)
    kh = k.reshape(B, Lk, n_head, d_head).transpose(0, 2, 1, 3)
    vh = v.reshape(B, Lk, n_head, d_head).transpose(0, 2, 1, 3)
    s = jnp.einsum("bhqd,bhkd->bhqk", qh, kh) * scale
    if mask is not None:
        s = jnp.where(mask[:, None, None, :] != 0, -1e9, s)
    p = jax.nn.softmax(s, axis=-1)
    o = jnp.einsum("bhqk,bhkd->bhqd", p, vh)
    o = o.transpose(0, 2, 1, 3).reshape(B, Lq, d_model)
    return o @ w_fc.T


if __name__ == "__main__":
    B, Lq, Lk = 2, 8, 8
    d_model, n_head = 32, 4

    key = jax.random.PRNGKey(0)
    kq, kk, kv, kw, km = jax.random.split(key, 5)
    q = jax.random.normal(kq, (B, Lq, d_model), dtype=jnp.float32)
    k = jax.random.normal(kk, (B, Lk, d_model), dtype=jnp.float32)
    v = jax.random.normal(kv, (B, Lk, d_model), dtype=jnp.float32)
    # nn.Linear(d_model, d_model, bias=False) weight, (out_features, in_features)
    w_fc = jax.random.normal(kw, (d_model, d_model),
                             dtype=jnp.float32) / math.sqrt(d_model)
    mask = jax.random.bernoulli(km, 0.25, (B, Lk))

    # 1) f32, no mask (specialized kernel: no mask DMA / bias add)
    out = block_transformer(q, k, v, w_fc, n_head, mask=None)
    jax.block_until_ready(out)
    ref = _reference(q, k, v, w_fc, n_head, mask=None)
    assert out.shape == (B, Lq, d_model)
    assert jnp.allclose(out, ref, atol=1e-4, rtol=1e-4), "f32 / no-mask mismatch"

    # 2) f32, masked
    out_m = block_transformer(q, k, v, w_fc, n_head, mask=mask)
    jax.block_until_ready(out_m)
    ref_m = _reference(q, k, v, w_fc, n_head, mask=mask)
    assert jnp.allclose(out_m, ref_m, atol=1e-4, rtol=1e-4), "f32 / masked mismatch"

    # 3) bf16 MXU path (v6e/v7x throughput mode): looser tolerance vs f32 ref
    out_bf = block_transformer(q, k, v, w_fc, n_head, mask=None,
                               compute_dtype=jnp.bfloat16)
    jax.block_until_ready(out_bf)
    assert jnp.allclose(out_bf.astype(jnp.float32), ref, atol=5e-2, rtol=5e-2), \
        "bf16 mismatch"

    print("KERNEL_OK")
</pallas_src>

<mosaic_0001>
module attributes {stable_mosaic.version = 11 : i64} {
  func.func @kernel(%arg0: i32, %arg1: memref<2x8x32xf32, #tpu.memory_space<vmem>>, %arg2: memref<2x8x32xf32, #tpu.memory_space<vmem>>, %arg3: memref<2x8x32xf32, #tpu.memory_space<vmem>>, %arg4: memref<32x32xf32, #tpu.memory_space<vmem>>, %arg5: memref<2x8x32xf32, #tpu.memory_space<vmem>>, %arg6: memref<2x8x32xf32, #tpu.memory_space<vmem>>) attributes {dimension_semantics = [#tpu.dimension_semantics<parallel>], iteration_bounds = array<i64: 1>, scalar_prefetch = 0 : i64, scratch_operands = 1 : i64, tpu.core_type = #tpu.core_type<tc>, window_params = [{transform_indices = @transform_0, window_bounds = array<i64: 2, 8, 32>}, {transform_indices = @transform_1, window_bounds = array<i64: 2, 8, 32>}, {transform_indices = @transform_2, window_bounds = array<i64: 2, 8, 32>}, {pipeline_mode = #tpu.pipeline_mode<synchronous>, transform_indices = @transform_3, window_bounds = array<i64: 32, 32>}, {transform_indices = @transform_4, window_bounds = array<i64: 2, 8, 32>}]} {
    %c0 = arith.constant 0 : index
    %c0_0 = arith.constant 0 : index
    %c0_1 = arith.constant 0 : index
    %0 = vector.load %arg1[%c0, %c0_0, %c0_1] : memref<2x8x32xf32, #tpu.memory_space<vmem>>, vector<2x8x32xf32>
    %cst = arith.constant 0.353553385 : f32
    %1 = vector.broadcast %cst : f32 to vector<2x8x32xf32>
    %2 = arith.mulf %0, %1 : vector<2x8x32xf32>
    %c0_2 = arith.constant 0 : index
    %c0_3 = arith.constant 0 : index
    %c0_4 = arith.constant 0 : index
    %3 = vector.load %arg2[%c0_2, %c0_3, %c0_4] : memref<2x8x32xf32, #tpu.memory_space<vmem>>, vector<2x8x32xf32>
    %c0_5 = arith.constant 0 : index
    %c0_6 = arith.constant 0 : index
    %c0_7 = arith.constant 0 : index
    %4 = vector.load %arg3[%c0_5, %c0_6, %c0_7] : memref<2x8x32xf32, #tpu.memory_space<vmem>>, vector<2x8x32xf32>
    %5 = vector.extract_strided_slice %2 {offsets = [0, 0, 0], sizes = [2, 8, 8], strides = [1, 1, 1]} : vector<2x8x32xf32> to vector<2x8x8xf32>
    %6 = vector.extract_strided_slice %3 {offsets = [0, 0, 0], sizes = [2, 8, 8], strides = [1, 1, 1]} : vector<2x8x32xf32> to vector<2x8x8xf32>
    "tpu.trace_start"() <{level = 10 : i32, message = "bqd,bkd->bqk"}> : () -> ()
    %cst_8 = arith.constant dense<0.000000e+00> : vector<2x8x8xf32>
    %7 = tpu.matmul %5, %6, %cst_8 {dimension_numbers = #tpu.dot_dimension_numbers<[2], [2], [1], [1], [0, 0, 0, 1, 1, 1], [0], [0]>} : vector<2x8x8xf32>, vector<2x8x8xf32>, vector<2x8x8xf32> -> vector<2x8x8xf32>
    "tpu.trace_stop"() : () -> ()
    %cst_9 = arith.constant dense<0xFF800000> : vector<2x8xf32>
    %8 = vector.multi_reduction <maximumf>, %7, %cst_9 [2] : vector<2x8x8xf32> to vector<2x8xf32>
    %9 = vector.shape_cast %8 : vector<2x8xf32> to vector<2x8x1xf32>
    %10 = vector.broadcast %9 : vector<2x8x1xf32> to vector<2x8x8xf32>
    %11 = arith.subf %7, %10 : vector<2x8x8xf32>
    %12 = math.exp %11 : vector<2x8x8xf32>
    %cst_10 = arith.constant dense<0.000000e+00> : vector<2x8xf32>
    %13 = vector.multi_reduction <add>, %12, %cst_10 [2] : vector<2x8x8xf32> to vector<2x8xf32>
    %14 = vector.shape_cast %13 : vector<2x8xf32> to vector<2x8x1xf32>
    %15 = tpu.reciprocal %14 : vector<2x8x1xf32> -> vector<2x8x1xf32>
    %16 = vector.broadcast %15 : vector<2x8x1xf32> to vector<2x8x8xf32>
    %17 = arith.mulf %12, %16 : vector<2x8x8xf32>
    %18 = vector.extract_strided_slice %4 {offsets = [0, 0, 0], sizes = [2, 8, 8], strides = [1, 1, 1]} : vector<2x8x32xf32> to vector<2x8x8xf32>
    "tpu.trace_start"() <{level = 10 : i32, message = "bqk,bkd->bqd"}> : () -> ()
    %cst_11 = arith.constant dense<0.000000e+00> : vector<2x8x8xf32>
    %19 = tpu.matmul %17, %18, %cst_11 {dimension_numbers = #tpu.dot_dimension_numbers<[2], [1], [1], [2], [0, 0, 0, 1, 1, 2], [0], [0]>} : vector<2x8x8xf32>, vector<2x8x8xf32>, vector<2x8x8xf32> -> vector<2x8x8xf32>
    "tpu.trace_stop"() : () -> ()
    %c0_12 = arith.constant 0 : index
    %c0_13 = arith.constant 0 : index
    %c0_14 = arith.constant 0 : index
    %20 = vector.load %arg6[%c0_12, %c0_13, %c0_14] : memref<2x8x32xf32, #tpu.memory_space<vmem>>, vector<2x8x8xf32>
    tpu.vector_store %arg6[%c0_12, %c0_13, %c0_14], %19 {strides = array<i32>} : memref<2x8x32xf32, #tpu.memory_space<vmem>>, vector<2x8x8xf32>,
    %21 = vector.extract_strided_slice %2 {offsets = [0, 0, 8], sizes = [2, 8, 8], strides = [1, 1, 1]} : vector<2x8x32xf32> to vector<2x8x8xf32>
    %22 = vector.extract_strided_slice %3 {offsets = [0, 0, 8], sizes = [2, 8, 8], strides = [1, 1, 1]} : vector<2x8x32xf32> to vector<2x8x8xf32>
    "tpu.trace_start"() <{level = 10 : i32, message = "bqd,bkd->bqk"}> : () -> ()
    %cst_15 = arith.constant dense<0.000000e+00> : vector<2x8x8xf32>
    %23 = tpu.matmul %21, %22, %cst_15 {dimension_numbers = #tpu.dot_dimension_numbers<[2], [2], [1], [1], [0, 0, 0, 1, 1, 1], [0], [0]>} : vector<2x8x8xf32>, vector<2x8x8xf32>, vector<2x8x8xf32> -> vector<2x8x8xf32>
    "tpu.trace_stop"() : () -> ()
    %cst_16 = arith.constant dense<0xFF800000> : vector<2x8xf32>
    %24 = vector.multi_reduction <maximumf>, %23, %cst_16 [2] : vector<2x8x8xf32> to vector<2x8xf32>
    %25 = vector.shape_cast %24 : vector<2x8xf32> to vector<2x8x1xf32>
    %26 = vector.broadcast %25 : vector<2x8x1xf32> to vector<2x8x8xf32>
    %27 = arith.subf %23, %26 : vector<2x8x8xf32>
    %28 = math.exp %27 : vector<2x8x8xf32>
    %cst_17 = arith.constant dense<0.000000e+00> : vector<2x8xf32>
    %29 = vector.multi_reduction <add>, %28, %cst_17 [2] : vector<2x8x8xf32> to vector<2x8xf32>
    %30 = vector.shape_cast %29 : vector<2x8xf32> to vector<2x8x1xf32>
    %31 = tpu.reciprocal %30 : vector<2x8x1xf32> -> vector<2x8x1xf32>
    %32 = vector.broadcast %31 : vector<2x8x1xf32> to vector<2x8x8xf32>
    %33 = arith.mulf %28, %32 : vector<2x8x8xf32>
    %34 = vector.extract_strided_slice %4 {offsets = [0, 0, 8], sizes = [2, 8, 8], strides = [1, 1, 1]} : vector<2x8x32xf32> to vector<2x8x8xf32>
    "tpu.trace_start"() <{level = 10 : i32, message = "bqk,bkd->bqd"}> : () -> ()
    %cst_18 = arith.constant dense<0.000000e+00> : vector<2x8x8xf32>
    %35 = tpu.matmul %33, %34, %cst_18 {dimension_numbers = #tpu.dot_dimension_numbers<[2], [1], [1], [2], [0, 0, 0, 1, 1, 2], [0], [0]>} : vector<2x8x8xf32>, vector<2x8x8xf32>, vector<2x8x8xf32> -> vector<2x8x8xf32>
    "tpu.trace_stop"() : () -> ()
    %c0_19 = arith.constant 0 : index
    %c0_20 = arith.constant 0 : index
    %c8 = arith.constant 8 : index
    %36 = vector.load %arg6[%c0_19, %c0_20, %c8] : memref<2x8x32xf32, #tpu.memory_space<vmem>>, vector<2x8x8xf32>
    tpu.vector_store %arg6[%c0_19, %c0_20, %c8], %35 {strides = array<i32>} : memref<2x8x32xf32, #tpu.memory_space<vmem>>, vector<2x8x8xf32>,
    %37 = vector.extract_strided_slice %2 {offsets = [0, 0, 16], sizes = [2, 8, 8], strides = [1, 1, 1]} : vector<2x8x32xf32> to vector<2x8x8xf32>
    %38 = vector.extract_strided_slice %3 {offsets = [0, 0, 16], sizes = [2, 8, 8], strides = [1, 1, 1]} : vector<2x8x32xf32> to vector<2x8x8xf32>
    "tpu.trace_start"() <{level = 10 : i32, message = "bqd,bkd->bqk"}> : () -> ()
    %cst_21 = arith.constant dense<0.000000e+00> : vector<2x8x8xf32>
    %39 = tpu.matmul %37, %38, %cst_21 {dimension_numbers = #tpu.dot_dimension_numbers<[2], [2], [1], [1], [0, 0, 0, 1, 1, 1], [0], [0]>} : vector<2x8x8xf32>, vector<2x8x8xf32>, vector<2x8x8xf32> -> vector<2x8x8xf32>
    "tpu.trace_stop"() : () -> ()
    %cst_22 = arith.constant dense<0xFF800000> : vector<2x8xf32>
    %40 = vector.multi_reduction <maximumf>, %39, %cst_22 [2] : vector<2x8x8xf32> to vector<2x8xf32>
    %41 = vector.shape_cast %40 : vector<2x8xf32> to vector<2x8x1xf32>
    %42 = vector.broadcast %41 : vector<2x8x1xf32> to vector<2x8x8xf32>
    %43 = arith.subf %39, %42 : vector<2x8x8xf32>
    %44 = math.exp %43 : vector<2x8x8xf32>
    %cst_23 = arith.constant dense<0.000000e+00> : vector<2x8xf32>
    %45 = vector.multi_reduction <add>, %44, %cst_23 [2] : vector<2x8x8xf32> to vector<2x8xf32>
    %46 = vector.shape_cast %45 : vector<2x8xf32> to vector<2x8x1xf32>
    %47 = tpu.reciprocal %46 : vector<2x8x1xf32> -> vector<2x8x1xf32>
    %48 = vector.broadcast %47 : vector<2x8x1xf32> to vector<2x8x8xf32>
    %49 = arith.mulf %44, %48 : vector<2x8x8xf32>
    %50 = vector.extract_strided_slice %4 {offsets = [0, 0, 16], sizes = [2, 8, 8], strides = [1, 1, 1]} : vector<2x8x32xf32> to vector<2x8x8xf32>
    "tpu.trace_start"() <{level = 10 : i32, message = "bqk,bkd->bqd"}> : () -> ()
    %cst_24 = arith.constant dense<0.000000e+00> : vector<2x8x8xf32>
    %51 = tpu.matmul %49, %50, %cst_24 {dimension_numbers = #tpu.dot_dimension_numbers<[2], [1], [1], [2], [0, 0, 0, 1, 1, 2], [0], [0]>} : vector<2x8x8xf32>, vector<2x8x8xf32>, vector<2x8x8xf32> -> vector<2x8x8xf32>
    "tpu.trace_stop"() : () -> ()
    %c0_25 = arith.constant 0 : index
    %c0_26 = arith.constant 0 : index
    %c16 = arith.constant 16 : index
    %52 = vector.load %arg6[%c0_25, %c0_26, %c16] : memref<2x8x32xf32, #tpu.memory_space<vmem>>, vector<2x8x8xf32>
    tpu.vector_store %arg6[%c0_25, %c0_26, %c16], %51 {strides = array<i32>} : memref<2x8x32xf32, #tpu.memory_space<vmem>>, vector<2x8x8xf32>,
    %53 = vector.extract_strided_slice %2 {offsets = [0, 0, 24], sizes = [2, 8, 8], strides = [1, 1, 1]} : vector<2x8x32xf32> to vector<2x8x8xf32>
    %54 = vector.extract_strided_slice %3 {offsets = [0, 0, 24], sizes = [2, 8, 8], strides = [1, 1, 1]} : vector<2x8x32xf32> to vector<2x8x8xf32>
    "tpu.trace_start"() <{level = 10 : i32, message = "bqd,bkd->bqk"}> : () -> ()
    %cst_27 = arith.constant dense<0.000000e+00> : vector<2x8x8xf32>
    %55 = tpu.matmul %53, %54, %cst_27 {dimension_numbers = #tpu.dot_dimension_numbers<[2], [2], [1], [1], [0, 0, 0, 1, 1, 1], [0], [0]>} : vector<2x8x8xf32>, vector<2x8x8xf32>, vector<2x8x8xf32> -> vector<2x8x8xf32>
    "tpu.trace_stop"() : () -> ()
    %cst_28 = arith.constant dense<0xFF800000> : vector<2x8xf32>
    %56 = vector.multi_reduction <maximumf>, %55, %cst_28 [2] : vector<2x8x8xf32> to vector<2x8xf32>
    %57 = vector.shape_cast %56 : vector<2x8xf32> to vector<2x8x1xf32>
    %58 = vector.broadcast %57 : vector<2x8x1xf32> to vector<2x8x8xf32>
    %59 = arith.subf %55, %58 : vector<2x8x8xf32>
    %60 = math.exp %59 : vector<2x8x8xf32>
    %cst_29 = arith.constant dense<0.000000e+00> : vector<2x8xf32>
    %61 = vector.multi_reduction <add>, %60, %cst_29 [2] : vector<2x8x8xf32> to vector<2x8xf32>
    %62 = vector.shape_cast %61 : vector<2x8xf32> to vector<2x8x1xf32>
    %63 = tpu.reciprocal %62 : vector<2x8x1xf32> -> vector<2x8x1xf32>
    %64 = vector.broadcast %63 : vector<2x8x1xf32> to vector<2x8x8xf32>
    %65 = arith.mulf %60, %64 : vector<2x8x8xf32>
    %66 = vector.extract_strided_slice %4 {offsets = [0, 0, 24], sizes = [2, 8, 8], strides = [1, 1, 1]} : vector<2x8x32xf32> to vector<2x8x8xf32>
    "tpu.trace_start"() <{level = 10 : i32, message = "bqk,bkd->bqd"}> : () -> ()
    %cst_30 = arith.constant dense<0.000000e+00> : vector<2x8x8xf32>
    %67 = tpu.matmul %65, %66, %cst_30 {dimension_numbers = #tpu.dot_dimension_numbers<[2], [1], [1], [2], [0, 0, 0, 1, 1, 2], [0], [0]>} : vector<2x8x8xf32>, vector<2x8x8xf32>, vector<2x8x8xf32> -> vector<2x8x8xf32>
    "tpu.trace_stop"() : () -> ()
    %c0_31 = arith.constant 0 : index
    %c0_32 = arith.constant 0 : index
    %c24 = arith.constant 24 : index
    %68 = vector.load %arg6[%c0_31, %c0_32, %c24] : memref<2x8x32xf32, #tpu.memory_space<vmem>>, vector<2x8x8xf32>
    tpu.vector_store %arg6[%c0_31, %c0_32, %c24], %67 {strides = array<i32>} : memref<2x8x32xf32, #tpu.memory_space<vmem>>, vector<2x8x8xf32>,
    %c0_33 = arith.constant 0 : index
    %c0_34 = arith.constant 0 : index
    %c0_35 = arith.constant 0 : index
    %69 = vector.load %arg6[%c0_33, %c0_34, %c0_35] : memref<2x8x32xf32, #tpu.memory_space<vmem>>, vector<2x8x32xf32>
    %70 = vector.shape_cast %69 : vector<2x8x32xf32> to vector<16x32xf32>
    %c0_36 = arith.constant 0 : index
    %c0_37 = arith.constant 0 : index
    %71 = vector.load %arg4[%c0_36, %c0_37] : memref<32x32xf32, #tpu.memory_space<vmem>>, vector<32x32xf32>
    %cst_38 = arith.constant dense<0.000000e+00> : vector<16x32xf32>
    %72 = tpu.matmul %70, %71, %cst_38 {dimension_numbers = #tpu.dot_dimension_numbers<[1], [0], [0], [1], [0, 0, 1, 1], [], []>} : vector<16x32xf32>, vector<32x32xf32>, vector<16x32xf32> -> vector<16x32xf32>
    %73 = vector.shape_cast %72 : vector<16x32xf32> to vector<2x8x32xf32>
    %c0_39 = arith.constant 0 : index
    %c0_40 = arith.constant 0 : index
    %c0_41 = arith.constant 0 : index
    %74 = vector.load %arg5[%c0_39, %c0_40, %c0_41] : memref<2x8x32xf32, #tpu.memory_space<vmem>>, vector<2x8x32xf32>
    tpu.vector_store %arg5[%c0_39, %c0_40, %c0_41], %73 {strides = array<i32>} : memref<2x8x32xf32, #tpu.memory_space<vmem>>, vector<2x8x32xf32>,
    return
  }
  func.func @transform_0(%arg0: i32) -> (i32, i32, i32) {
    %c0_i32 = arith.constant 0 : i32
    %c0_i32_0 = arith.constant 0 : i32
    %c0_i32_1 = arith.constant 0 : i32
    return %arg0, %c0_i32, %c0_i32_0 : i32, i32, i32
  }
  func.func @transform_1(%arg0: i32) -> (i32, i32, i32) {
    %c0_i32 = arith.constant 0 : i32
    %c0_i32_0 = arith.constant 0 : i32
    %c0_i32_1 = arith.constant 0 : i32
    return %arg0, %c0_i32, %c0_i32_0 : i32, i32, i32
  }
  func.func @transform_2(%arg0: i32) -> (i32, i32, i32) {
    %c0_i32 = arith.constant 0 : i32
    %c0_i32_0 = arith.constant 0 : i32
    %c0_i32_1 = arith.constant 0 : i32
    return %arg0, %c0_i32, %c0_i32_0 : i32, i32, i32
  }
  func.func @transform_3(%arg0: i32) -> (i32, i32) {
    %c0_i32 = arith.constant 0 : i32
    %c0_i32_0 = arith.constant 0 : i32
    %c0_i32_1 = arith.constant 0 : i32
    return %c0_i32, %c0_i32_0 : i32, i32
  }
  func.func @transform_4(%arg0: i32) -> (i32, i32, i32) {
    %c0_i32 = arith.constant 0 : i32
    %c0_i32_0 = arith.constant 0 : i32
    %c0_i32_1 = arith.constant 0 : i32
    return %arg0, %c0_i32, %c0_i32_0 : i32, i32, i32
  }
}

module attributes {stable_mosaic.version = 11 : i64} {
  func.func @kernel(%arg0: i32, %arg1: memref<2x8x32xf32, #tpu.memory_space<vmem>>, %arg2: memref<2x8x32xf32, #tpu.memory_space<vmem>>, %arg3: memref<2x8x32xf32, #tpu.memory_space<vmem>>, %arg4: memref<32x32xf32, #tpu.memory_space<vmem>>, %arg5: memref<2x8x32xf32, #tpu.memory_space<vmem>>, %arg6: memref<2x8x32xf32, #tpu.memory_space<vmem>>) attributes {dimension_semantics = [#tpu.dimension_semantics<parallel>], iteration_bounds = array<i64: 1>, scalar_prefetch = 0 : i64, scratch_operands = 1 : i64, tpu.core_type = #tpu.core_type<tc>, window_params = [{transform_indices = @transform_0, window_bounds = array<i64: 2, 8, 32>}, {transform_indices = @transform_1, window_bounds = array<i64: 2, 8, 32>}, {transform_indices = @transform_2, window_bounds = array<i64: 2, 8, 32>}, {pipeline_mode = #tpu.pipeline_mode<synchronous>, transform_indices = @transform_3, window_bounds = array<i64: 32, 32>}, {transform_indices = @transform_4, window_bounds = array<i64: 2, 8, 32>}]} {
    %c0 = arith.constant 0 : index
    %c0_0 = arith.constant 0 : index
    %c0_1 = arith.constant 0 : index
    %0 = vector.load %arg1[%c0, %c0_0, %c0_1] : memref<2x8x32xf32, #tpu.memory_space<vmem>>, vector<2x8x32xf32>
    %cst = arith.constant 0.353553385 : f32
    %1 = vector.broadcast %cst : f32 to vector<2x8x32xf32>
    %2 = arith.mulf %0, %1 : vector<2x8x32xf32>
    %c0_2 = arith.constant 0 : index
    %c0_3 = arith.constant 0 : index
    %c0_4 = arith.constant 0 : index
    %3 = vector.load %arg2[%c0_2, %c0_3, %c0_4] : memref<2x8x32xf32, #tpu.memory_space<vmem>>, vector<2x8x32xf32>
    %c0_5 = arith.constant 0 : index
    %c0_6 = arith.constant 0 : index
    %c0_7 = arith.constant 0 : index
    %4 = vector.load %arg3[%c0_5, %c0_6, %c0_7] : memref<2x8x32xf32, #tpu.memory_space<vmem>>, vector<2x8x32xf32>
    %5 = vector.extract_strided_slice %2 {offsets = [0, 0, 0], sizes = [2, 8, 8], strides = [1, 1, 1]} : vector<2x8x32xf32> to vector<2x8x8xf32>
    %6 = vector.extract_strided_slice %3 {offsets = [0, 0, 0], sizes = [2, 8, 8], strides = [1, 1, 1]} : vector<2x8x32xf32> to vector<2x8x8xf32>
    "tpu.trace_start"() <{level = 10 : i32, message = "bqd,bkd->bqk"}> : () -> ()
    %cst_8 = arith.constant dense<0.000000e+00> : vector<2x8x8xf32>
    %7 = tpu.matmul %5, %6, %cst_8 {dimension_numbers = #tpu.dot_dimension_numbers<[2], [2], [1], [1], [0, 0, 0, 1, 1, 1], [0], [0]>} : vector<2x8x8xf32>, vector<2x8x8xf32>, vector<2x8x8xf32> -> vector<2x8x8xf32>
    "tpu.trace_stop"() : () -> ()
    %cst_9 = arith.constant dense<0xFF800000> : vector<2x8xf32>
    %8 = vector.multi_reduction <maximumf>, %7, %cst_9 [2] : vector<2x8x8xf32> to vector<2x8xf32>
    %9 = vector.shape_cast %8 : vector<2x8xf32> to vector<2x8x1xf32>
    %10 = vector.broadcast %9 : vector<2x8x1xf32> to vector<2x8x8xf32>
    %11 = arith.subf %7, %10 : vector<2x8x8xf32>
    %12 = math.exp %11 : vector<2x8x8xf32>
    %cst_10 = arith.constant dense<0.000000e+00> : vector<2x8xf32>
    %13 = vector.multi_reduction <add>, %12, %cst_10 [2] : vector<2x8x8xf32> to vector<2x8xf32>
    %14 = vector.shape_cast %13 : vector<2x8xf32> to vector<2x8x1xf32>
    %15 = tpu.reciprocal %14 : vector<2x8x1xf32> -> vector<2x8x1xf32>
    %16 = vector.broadcast %15 : vector<2x8x1xf32> to vector<2x8x8xf32>
    %17 = arith.mulf %12, %16 : vector<2x8x8xf32>
    %18 = vector.extract_strided_slice %4 {offsets = [0, 0, 0], sizes = [2, 8, 8], strides = [1, 1, 1]} : vector<2x8x32xf32> to vector<2x8x8xf32>
    "tpu.trace_start"() <{level = 10 : i32, message = "bqk,bkd->bqd"}> : () -> ()
    %cst_11 = arith.constant dense<0.000000e+00> : vector<2x8x8xf32>
    %19 = tpu.matmul %17, %18, %cst_11 {dimension_numbers = #tpu.dot_dimension_numbers<[2], [1], [1], [2], [0, 0, 0, 1, 1, 2], [0], [0]>} : vector<2x8x8xf32>, vector<2x8x8xf32>, vector<2x8x8xf32> -> vector<2x8x8xf32>
    "tpu.trace_stop"() : () -> ()
    %c0_12 = arith.constant 0 : index
    %c0_13 = arith.constant 0 : index
    %c0_14 = arith.constant 0 : index
    %20 = vector.load %arg6[%c0_12, %c0_13, %c0_14] : memref<2x8x32xf32, #tpu.memory_space<vmem>>, vector<2x8x8xf32>
    tpu.vector_store %arg6[%c0_12, %c0_13, %c0_14], %19 {strides = array<i32>} : memref<2x8x32xf32, #tpu.memory_space<vmem>>, vector<2x8x8xf32>,
    %21 = vector.extract_strided_slice %2 {offsets = [0, 0, 8], sizes = [2, 8, 8], strides = [1, 1, 1]} : vector<2x8x32xf32> to vector<2x8x8xf32>
    %22 = vector.extract_strided_slice %3 {offsets = [0, 0, 8], sizes = [2, 8, 8], strides = [1, 1, 1]} : vector<2x8x32xf32> to vector<2x8x8xf32>
    "tpu.trace_start"() <{level = 10 : i32, message = "bqd,bkd->bqk"}> : () -> ()
    %cst_15 = arith.constant dense<0.000000e+00> : vector<2x8x8xf32>
    %23 = tpu.matmul %21, %22, %cst_15 {dimension_numbers = #tpu.dot_dimension_numbers<[2], [2], [1], [1], [0, 0, 0, 1, 1, 1], [0], [0]>} : vector<2x8x8xf32>, vector<2x8x8xf32>, vector<2x8x8xf32> -> vector<2x8x8xf32>
    "tpu.trace_stop"() : () -> ()
    %cst_16 = arith.constant dense<0xFF800000> : vector<2x8xf32>
    %24 = vector.multi_reduction <maximumf>, %23, %cst_16 [2] : vector<2x8x8xf32> to vector<2x8xf32>
    %25 = vector.shape_cast %24 : vector<2x8xf32> to vector<2x8x1xf32>
    %26 = vector.broadcast %25 : vector<2x8x1xf32> to vector<2x8x8xf32>
    %27 = arith.subf %23, %26 : vector<2x8x8xf32>
    %28 = math.exp %27 : vector<2x8x8xf32>
    %cst_17 = arith.constant dense<0.000000e+00> : vector<2x8xf32>
    %29 = vector.multi_reduction <add>, %28, %cst_17 [2] : vector<2x8x8xf32> to vector<2x8xf32>
    %30 = vector.shape_cast %29 : vector<2x8xf32> to vector<2x8x1xf32>
    %31 = tpu.reciprocal %30 : vector<2x8x1xf32> -> vector<2x8x1xf32>
    %32 = vector.broadcast %31 : vector<2x8x1xf32> to vector<2x8x8xf32>
    %33 = arith.mulf %28, %32 : vector<2x8x8xf32>
    %34 = vector.extract_strided_slice %4 {offsets = [0, 0, 8], sizes = [2, 8, 8], strides = [1, 1, 1]} : vector<2x8x32xf32> to vector<2x8x8xf32>
    "tpu.trace_start"() <{level = 10 : i32, message = "bqk,bkd->bqd"}> : () -> ()
    %cst_18 = arith.constant dense<0.000000e+00> : vector<2x8x8xf32>
    %35 = tpu.matmul %33, %34, %cst_18 {dimension_numbers = #tpu.dot_dimension_numbers<[2], [1], [1], [2], [0, 0, 0, 1, 1, 2], [0], [0]>} : vector<2x8x8xf32>, vector<2x8x8xf32>, vector<2x8x8xf32> -> vector<2x8x8xf32>
    "tpu.trace_stop"() : () -> ()
    %c0_19 = arith.constant 0 : index
    %c0_20 = arith.constant 0 : index
    %c8 = arith.constant 8 : index
    %36 = vector.load %arg6[%c0_19, %c0_20, %c8] : memref<2x8x32xf32, #tpu.memory_space<vmem>>, vector<2x8x8xf32>
    tpu.vector_store %arg6[%c0_19, %c0_20, %c8], %35 {strides = array<i32>} : memref<2x8x32xf32, #tpu.memory_space<vmem>>, vector<2x8x8xf32>,
    %37 = vector.extract_strided_slice %2 {offsets = [0, 0, 16], sizes = [2, 8, 8], strides = [1, 1, 1]} : vector<2x8x32xf32> to vector<2x8x8xf32>
    %38 = vector.extract_strided_slice %3 {offsets = [0, 0, 16], sizes = [2, 8, 8], strides = [1, 1, 1]} : vector<2x8x32xf32> to vector<2x8x8xf32>
    "tpu.trace_start"() <{level = 10 : i32, message = "bqd,bkd->bqk"}> : () -> ()
    %cst_21 = arith.constant dense<0.000000e+00> : vector<2x8x8xf32>
    %39 = tpu.matmul %37, %38, %cst_21 {dimension_numbers = #tpu.dot_dimension_numbers<[2], [2], [1], [1], [0, 0, 0, 1, 1, 1], [0], [0]>} : vector<2x8x8xf32>, vector<2x8x8xf32>, vector<2x8x8xf32> -> vector<2x8x8xf32>
    "tpu.trace_stop"() : () -> ()
    %cst_22 = arith.constant dense<0xFF800000> : vector<2x8xf32>
    %40 = vector.multi_reduction <maximumf>, %39, %cst_22 [2] : vector<2x8x8xf32> to vector<2x8xf32>
    %41 = vector.shape_cast %40 : vector<2x8xf32> to vector<2x8x1xf32>
    %42 = vector.broadcast %41 : vector<2x8x1xf32> to vector<2x8x8xf32>
    %43 = arith.subf %39, %42 : vector<2x8x8xf32>
    %44 = math.exp %43 : vector<2x8x8xf32>
    %cst_23 = arith.constant dense<0.000000e+00> : vector<2x8xf32>
    %45 = vector.multi_reduction <add>, %44, %cst_23 [2] : vector<2x8x8xf32> to vector<2x8xf32>
    %46 = vector.shape_cast %45 : vector<2x8xf32> to vector<2x8x1xf32>
    %47 = tpu.reciprocal %46 : vector<2x8x1xf32> -> vector<2x8x1xf32>
    %48 = vector.broadcast %47 : vector<2x8x1xf32> to vector<2x8x8xf32>
    %49 = arith.mulf %44, %48 : vector<2x8x8xf32>
    %50 = vector.extract_strided_slice %4 {offsets = [0, 0, 16], sizes = [2, 8, 8], strides = [1, 1, 1]} : vector<2x8x32xf32> to vector<2x8x8xf32>
    "tpu.trace_start"() <{level = 10 : i32, message = "bqk,bkd->bqd"}> : () -> ()
    %cst_24 = arith.constant dense<0.000000e+00> : vector<2x8x8xf32>
    %51 = tpu.matmul %49, %50, %cst_24 {dimension_numbers = #tpu.dot_dimension_numbers<[2], [1], [1], [2], [0, 0, 0, 1, 1, 2], [0], [0]>} : vector<2x8x8xf32>, vector<2x8x8xf32>, vector<2x8x8xf32> -> vector<2x8x8xf32>
    "tpu.trace_stop"() : () -> ()
    %c0_25 = arith.constant 0 : index
    %c0_26 = arith.constant 0 : index
    %c16 = arith.constant 16 : index
    %52 = vector.load %arg6[%c0_25, %c0_26, %c16] : memref<2x8x32xf32, #tpu.memory_space<vmem>>, vector<2x8x8xf32>
    tpu.vector_store %arg6[%c0_25, %c0_26, %c16], %51 {strides = array<i32>} : memref<2x8x32xf32, #tpu.memory_space<vmem>>, vector<2x8x8xf32>,
    %53 = vector.extract_strided_slice %2 {offsets = [0, 0, 24], sizes = [2, 8, 8], strides = [1, 1, 1]} : vector<2x8x32xf32> to vector<2x8x8xf32>
    %54 = vector.extract_strided_slice %3 {offsets = [0, 0, 24], sizes = [2, 8, 8], strides = [1, 1, 1]} : vector<2x8x32xf32> to vector<2x8x8xf32>
    "tpu.trace_start"() <{level = 10 : i32, message = "bqd,bkd->bqk"}> : () -> ()
    %cst_27 = arith.constant dense<0.000000e+00> : vector<2x8x8xf32>
    %55 = tpu.matmul %53, %54, %cst_27 {dimension_numbers = #tpu.dot_dimension_numbers<[2], [2], [1], [1], [0, 0, 0, 1, 1, 1], [0], [0]>} : vector<2x8x8xf32>, vector<2x8x8xf32>, vector<2x8x8xf32> -> vector<2x8x8xf32>
    "tpu.trace_stop"() : () -> ()
    %cst_28 = arith.constant dense<0xFF800000> : vector<2x8xf32>
    %56 = vector.multi_reduction <maximumf>, %55, %cst_28 [2] : vector<2x8x8xf32> to vector<2x8xf32>
    %57 = vector.shape_cast %56 : vector<2x8xf32> to vector<2x8x1xf32>
    %58 = vector.broadcast %57 : vector<2x8x1xf32> to vector<2x8x8xf32>
    %59 = arith.subf %55, %58 : vector<2x8x8xf32>
    %60 = math.exp %59 : vector<2x8x8xf32>
    %cst_29 = arith.constant dense<0.000000e+00> : vector<2x8xf32>
    %61 = vector.multi_reduction <add>, %60, %cst_29 [2] : vector<2x8x8xf32> to vector<2x8xf32>
    %62 = vector.shape_cast %61 : vector<2x8xf32> to vector<2x8x1xf32>
    %63 = tpu.reciprocal %62 : vector<2x8x1xf32> -> vector<2x8x1xf32>
    %64 = vector.broadcast %63 : vector<2x8x1xf32> to vector<2x8x8xf32>
    %65 = arith.mulf %60, %64 : vector<2x8x8xf32>
    %66 = vector.extract_strided_slice %4 {offsets = [0, 0, 24], sizes = [2, 8, 8], strides = [1, 1, 1]} : vector<2x8x32xf32> to vector<2x8x8xf32>
    "tpu.trace_start"() <{level = 10 : i32, message = "bqk,bkd->bqd"}> : () -> ()
    %cst_30 = arith.constant dense<0.000000e+00> : vector<2x8x8xf32>
    %67 = tpu.matmul %65, %66, %cst_30 {dimension_numbers = #tpu.dot_dimension_numbers<[2], [1], [1], [2], [0, 0, 0, 1, 1, 2], [0], [0]>} : vector<2x8x8xf32>, vector<2x8x8xf32>, vector<2x8x8xf32> -> vector<2x8x8xf32>
    "tpu.trace_stop"() : () -> ()
    %c0_31 = arith.constant 0 : index
    %c0_32 = arith.constant 0 : index
    %c24 = arith.constant 24 : index
    %68 = vector.load %arg6[%c0_31, %c0_32, %c24] : memref<2x8x32xf32, #tpu.memory_space<vmem>>, vector<2x8x8xf32>
    tpu.vector_store %arg6[%c0_31, %c0_32, %c24], %67 {strides = array<i32>} : memref<2x8x32xf32, #tpu.memory_space<vmem>>, vector<2x8x8xf32>,
    %c0_33 = arith.constant 0 : index
    %c0_34 = arith.constant 0 : index
    %c0_35 = arith.constant 0 : index
    %69 = vector.load %arg6[%c0_33, %c0_34, %c0_35] : memref<2x8x32xf32, #tpu.memory_space<vmem>>, vector<2x8x32xf32>
    %70 = vector.shape_cast %69 : vector<2x8x32xf32> to vector<16x32xf32>
    %c0_36 = arith.constant 0 : index
    %c0_37 = arith.constant 0 : index
    %71 = vector.load %arg4[%c0_36, %c0_37] : memref<32x32xf32, #tpu.memory_space<vmem>>, vector<32x32xf32>
    %cst_38 = arith.constant dense<0.000000e+00> : vector<16x32xf32>
    %72 = tpu.matmul %70, %71, %cst_38 {dimension_numbers = #tpu.dot_dimension_numbers<[1], [0], [0], [1], [0, 0, 1, 1], [], []>} : vector<16x32xf32>, vector<32x32xf32>, vector<16x32xf32> -> vector<16x32xf32>
    %73 = vector.shape_cast %72 : vector<16x32xf32> to vector<2x8x32xf32>
    %c0_39 = arith.constant 0 : index
    %c0_40 = arith.constant 0 : index
    %c0_41 = arith.constant 0 : index
    %74 = vector.load %arg5[%c0_39, %c0_40, %c0_41] : memref<2x8x32xf32, #tpu.memory_space<vmem>>, vector<2x8x32xf32>
    tpu.vector_store %arg5[%c0_39, %c0_40, %c0_41], %73 {strides = array<i32>} : memref<2x8x32xf32, #tpu.memory_space<vmem>>, vector<2x8x32xf32>,
    return
  }
  func.func @transform_0(%arg0: i32) -> (i32, i32, i32) {
    %c0_i32 = arith.constant 0 : i32
    %c0_i32_0 = arith.constant 0 : i32
    %c0_i32_1 = arith.constant 0 : i32
    return %arg0, %c0_i32, %c0_i32_0 : i32, i32, i32
  }
  func.func @transform_1(%arg0: i32) -> (i32, i32, i32) {
    %c0_i32 = arith.constant 0 : i32
    %c0_i32_0 = arith.constant 0 : i32
    %c0_i32_1 = arith.constant 0 : i32
    return %arg0, %c0_i32, %c0_i32_0 : i32, i32, i32
  }
  func.func @transform_2(%arg0: i32) -> (i32, i32, i32) {
    %c0_i32 = arith.constant 0 : i32
    %c0_i32_0 = arith.constant 0 : i32
    %c0_i32_1 = arith.constant 0 : i32
    return %arg0, %c0_i32, %c0_i32_0 : i32, i32, i32
  }
  func.func @transform_3(%arg0: i32) -> (i32, i32) {
    %c0_i32 = arith.constant 0 : i32
    %c0_i32_0 = arith.constant 0 : i32
    %c0_i32_1 = arith.constant 0 : i32
    return %c0_i32, %c0_i32_0 : i32, i32
  }
  func.func @transform_4(%arg0: i32) -> (i32, i32, i32) {
    %c0_i32 = arith.constant 0 : i32
    %c0_i32_0 = arith.constant 0 : i32
    %c0_i32_1 = arith.constant 0 : i32
    return %arg0, %c0_i32, %c0_i32_0 : i32, i32, i32
  }
}

</mosaic_0001>

<bundles_post_ra>
// kernel: tpu_custom_call.1
= control target key start
LH: loop header
LB: loop body
LE: loop exit
PB: predicated region body
PF: predicated region fallthrough
CT: control target
= control target key end

     0   :  { %9 = vsyncpa [#allocation4], 0  ;;  %s1184_s0 = inlined_call_operand.hbm [shape: f32[2,8,32], index: 0, kind: input, shape index: {}]   ;;  %s1185_s1 = inlined_call_operand.hbm [shape: f32[2,8,32], index: 1, kind: input, shape index: {}]   ;;  %s1186_s2 = inlined_call_operand.hbm [shape: f32[2,8,32], index: 2, kind: input, shape index: {}]   ;;  %s1187_s3 = inlined_call_operand.hbm [shape: f32[32,32], index: 3, kind: input, shape index: {}]   ;;  %s1188_s4 = inlined_call_operand.hbm [shape: f32[2,8,32], index: 4, kind: output, shape index: {}]  }
   0x1   :  { %10 = vsyncpa [#allocation7], 0 }
   0x2   :  { %11 = vsyncpa [#allocation10], 0 }
   0x3   :  { %12 = vsyncpa [#allocation5], 0  ;;  %s30_s17 = sshll.u32 %s1185_s1, 4  ;;  %s1003_s18 = smov [#allocation6]   ;;  %s31_s17 = int_to_ptr.hbm [resolvable:$true] %s30_s17 }
   0x4   :  { %s32_s19 = sshll.u32 %s1003_s18, 4  ;;  %s17_s22 = sshll.u32 %s1184_s0, 4  ;;  %s33_s19 = int_to_ptr.vmem [resolvable:$true] %s32_s19  ;;  %s18_s22 = int_to_ptr.hbm [resolvable:$true] %s17_s22 }
   0x5   :  { %s1004_s23 = smov 128   ;;  %s1005_s24 = smov 8  }
   0x6   :  { %38 = dma.hbm_to_vmem [thread:$0]  %s31_s17, 256, %s33_s19, [#allocation7], %s1004_s23, %s1004_s23, %s1005_s24  }
   0x7   :  { %s1006_s25 = smov [#allocation3]   ;;  %s43_s1 = sshll.u32 %s1186_s2, 4  ;;  %s44_s1 = int_to_ptr.hbm [resolvable:$true] %s43_s1 }
   0x8   :  { %s19_s26 = sshll.u32 %s1006_s25, 4  ;;  %s56_s30 = sshll.u32 %s1187_s3, 4  ;;  %s20_s26 = int_to_ptr.vmem [resolvable:$true] %s19_s26  ;;  %s57_s30 = int_to_ptr.hbm [resolvable:$true] %s56_s30 }
   0x9   :  { %25 = dma.hbm_to_vmem [thread:$0]  %s18_s22, 256, %s20_s26, [#allocation4], %s1004_s23, %s1004_s23, %s1005_s24  }
   0xa   :  { %s1007_s5 = smov [#allocation8]   ;;  %s1008_s7 = smov [#allocation9]  }
   0xb   :  { %s45_s6 = sshll.u32 %s1007_s5, 4  ;;  %s58_s2 = sshll.u32 %s1008_s7, 4  ;;  %s46_s6 = int_to_ptr.vmem [resolvable:$true] %s45_s6  ;;  %s59_s2 = int_to_ptr.vmem [resolvable:$true] %s58_s2 }
   0xc   :  { %51 = dma.hbm_to_vmem [thread:$0]  %s44_s1, 256, %s46_s6, [#allocation7], %s1004_s23, %s1004_s23, %s1005_s24  }
   0xd   :  { %64 = dma.hbm_to_vmem [thread:$0]  %s57_s30, 512, %s59_s2, [#allocation10], %s1004_s23, %s1004_s23, %s1005_s24  }
   0xe   :  { %995 = dma.done.wait [#allocation4], 256  }
   0xf   :  { %996 = vsyncadd [#allocation4], 4294967040 }
  0x10   :  { %997 = dma.done.wait [#allocation7], 512  }
  0x11   :  { %998 = vsyncadd [#allocation7], 4294966784 }
  0x12   :  { %999 = dma.done.wait [#allocation10], 512  }
  0x13   :  { %1000 = vsyncadd [#allocation10], 4294966784  ;;  %vm89_vm0 = vcmask 64512   ;;  %v86_v0 = vld [vmem:[#allocation6 + $0x8] sm:$0xff]  ;;  %v82_v1 = vld [vmem:[#allocation3 + $0x8] sm:$0xff]  ;;  %s1009_s3 = smov 112  }
  0x14   :  { %v85_v2 = vld [vmem:[#allocation6] sm:$0xff]  ;;  %802 = vmatpush.xpose.msk.msra.mxu1 %vm89_vm0, %v86_v0  ;;  %v84_v3 = vmul.f32 0.35355338, %v82_v1  ;;  %v81_v4 = vld [vmem:[#allocation3] sm:$0xff]  ;;  %s1010_s8 = smov 120   ;;  %s1011_s9 = smov 104  }
  0x15   :  { %800 = vmatpush.xpose.msk.msra.mxu0 %vm89_vm0, %v85_v2  ;;  %v83_v5 = vmul.f32 0.35355338, %v81_v4  ;;  %409 = vrot.lane.b32.xlu1 %v85_v2, %s1009_s3  ;;  %v1082_v18 = vld [vmem:[#allocation8] sm:$0xff]  ;;  %v1088_v22 = vld [vmem:[#allocation8 + $0x8] sm:$0xff]  ;;  %s1012_s10 = smov 16   ;;  %s1013_s11 = smov 24  }
  0x16   :  { %240 = vrot.lane.b32.xlu2 %v85_v2, %s1010_s8  ;;  %208 = vmatpush.msra.mxu2 %v1082_v18  ;;  %s1014_s12 = smov [#allocation11]   ;;  %s785_s16 = sshll.u32 %s1188_s4, 4  ;;  %s786_s16 = int_to_ptr.hbm [resolvable:$true] %s785_s16 }
  0x17   :  { %803 = vmatmul.msk.f32.vlgmr.msra.gmra.mxu1 %vm89_vm0, %v84_v3  ;;  %231 = vmatpush.msra.mxu3 %v1088_v22  ;;  %s783_s13 = sshll.u32 %s1014_s12, 4  ;;  %s784_s13 = int_to_ptr.vmem [resolvable:$true] %s783_s13 }
  0x18   :  { %801 = vmatmul.msk.f32.vlgmr.msra.gmra.mxu0 %vm89_vm0, %v83_v5 }
  0x1e   :  { %238 = vrot.lane.b32.xlu2 %v83_v5, %s1010_s8 }
  0x26   :  { %266 = vrot.lane.b32.xlu2 %v84_v3, %s1010_s8 }
  0x2e   :  { %407 = vrot.lane.b32.xlu2 %v83_v5, %s1009_s3 }
  0x36   :  { %437 = vrot.lane.b32.xlu2 %v86_v0, %s1009_s3 }
  0x3e   :  { %435 = vrot.lane.b32.xlu2 %v84_v3, %s1009_s3 }
  0x46   :  { %602 = vrot.lane.b32.xlu2 %v84_v3, %s1011_s9 }
  0x70   :  { %v241_v23 = vpop.permute.xlu2 %240 }
  0x71   :  { %806 = vmatpush.xpose.msk.msrb.mxu3 %vm89_vm0, %v241_v23 }
  0x78   :  { %v239_v24 = vpop.permute.xlu2 %238 }
  0x80   :  { %v267_v26 = vpop.permute.xlu2 %266 }
  0x87   :  { %v410_v19 = vpop.permute.xlu1 %409 }
  0x88   :  { %812 = vmatpush.xpose.msk.msrb.mxu2 %vm89_vm0, %v410_v19  ;;  %v408_v40 = vpop.permute.xlu2 %407 }
  0x90   :  { %v438_v53 = vpop.permute.xlu2 %437 }
  0x94   :  { %v139_v6 = vpop.f32.mrf.mxu1 }
  0x95   :  { %v145_v7 = vsel %vm89_vm0, %v139_v6, -inf  ;;  %v113_v8 = vpop.f32.mrf.mxu0 }
  0x96   :  { %146 = vmax.xlane.f32.xlu0 %v145_v7  ;;  %v142_v9 = vsel %vm89_vm0, %v113_v8, -inf }
  0x98   :  { %v436_v55 = vpop.permute.xlu2 %435 }
  0x9e   :  { %143 = vmax.xlane.f32.xlu0 %v142_v9 }
  0xa0   :  { %v603_v57 = vpop.permute.xlu2 %602 }
  0xb2   :  { %268 = vrot.lane.b32.xlu0 %v86_v0, %s1010_s8 }
  0xba   :  { %576 = vrot.lane.b32.xlu0 %v85_v2, %s1011_s9 }
  0xc2   :  { %604 = vrot.lane.b32.xlu0 %v86_v0, %s1011_s9 }
 0x109   :  { %v147_v10 = vpop.xlane.xlu0 %146 }
 0x10a   :  { %v149_v11 = vsub.f32 %v139_v6, %v147_v10 }
 0x10c   :  { %v152_v12 = vmul.f32 1.442695, %v149_v11 }
 0x10e   :  { %843 = vpow2.f32 %v152_v12 }
 0x111   :  { %v144_v13 = vpop.xlane.xlu0 %143 }
 0x112   :  { %v148_v14 = vsub.f32 %v113_v8, %v144_v13  ;;  %v838_v8 = vpack.i.bf16 %v1088_v22, %v1082_v18 }
 0x114   :  { %v844_v15 = vpop.eup %843  ;;  %v150_v16 = vmul.f32 1.442695, %v148_v14 }
 0x115   :  { %v157_v17 = vsel %vm89_vm0, %v844_v15, 0.0 }
 0x116   :  { %845 = vpow2.f32 %v150_v16  ;;  %158 = vadd.xlane.f32.xlu1 %v157_v17 }
 0x11c   :  { %v846_v20 = vpop.eup %845 }
 0x11d   :  { %v154_v21 = vsel %vm89_vm0, %v846_v20, 0.0 }
 0x11e   :  { %155 = vadd.xlane.f32.xlu1 %v154_v21 }
 0x124   :  { %v269_v35 = vpop.permute.xlu0 %268 }
 0x12c   :  { %v577_v50 = vpop.permute.xlu0 %576 }
 0x134   :  { %v605_v54 = vpop.permute.xlu0 %604 }
 0x137   :  { %574 = vrot.lane.b32.xlu1 %v83_v5, %s1011_s9 }
 0x189   :  { %v159_v25 = vpop.xlane.xlu1 %158 }
 0x18a   :  { %847 = vrcp.f32 %v159_v25  ;;  %v185_v31 = vand.u32 2147483648, %v159_v25  ;;  %v183_v33 = vand.u32 2147483647, %v159_v25  ;;  %vm179_vm2 = vweird.f32 %v159_v25 }
 0x18c   :  { %v186_v37 = vor.u32 1.1754944e-38, %v185_v31  ;;  %vm184_vm4 = vcmp.eq.f32.partialorder %v183_v33, 8.507059e+37 }
 0x190   :  { %v848_v27 = vpop.eup %847 }
 0x191   :  { %v175_v28 = vmul.f32 %v848_v27, %v159_v25  ;;  %v156_v29 = vpop.xlane.xlu1 %155  ;;  %vm180_vm1 = vweird.f32 %v848_v27 }
 0x192   :  { %849 = vrcp.f32 %v156_v29  ;;  %vm181_vm3 = vmor %vm179_vm2, %vm180_vm1  ;;  %v171_v44 = vand.u32 2147483648, %v156_v29  ;;  %v169_v46 = vand.u32 2147483647, %v156_v29  ;;  %vm165_vm6 = vweird.f32 %v156_v29 }
 0x193   :  { %v176_v30 = vsub.f32 1.0, %v175_v28 }
 0x194   :  { %v172_v48 = vor.u32 1.1754944e-38, %v171_v44  ;;  %vm170_vm8 = vcmp.eq.f32.partialorder %v169_v46, 8.507059e+37 }
 0x195   :  { %v177_v32 = vmul.f32 %v848_v27, %v176_v30 }
 0x197   :  { %v178_v34 = vadd.f32 %v848_v27, %v177_v32 }
 0x198   :  { %v850_v36 = vpop.eup %849 }
 0x199   :  { %v161_v38 = vmul.f32 %v850_v36, %v156_v29  ;;  %v182_v39 = vsel %vm181_vm3, %v848_v27, %v178_v34  ;;  %vm166_vm5 = vweird.f32 %v850_v36 }
 0x19a   :  { %v187_v41 = vsel %vm184_vm4, %v186_v37, %v182_v39  ;;  %vm167_vm7 = vmor %vm165_vm6, %vm166_vm5 }
 0x19b   :  { %v162_v42 = vsub.f32 1.0, %v161_v38  ;;  %v189_v43 = vmul.f32 %v844_v15, %v187_v41 }
 0x19d   :  { %v163_v45 = vmul.f32 %v850_v36, %v162_v42  ;;  %805 = vmatmul.msk.f32.vlgmr.msra.gmra.mxu3 %vm89_vm0, %v189_v43 }
 0x19e   :  { %808 = vmatpush.xpose.msk.msra.mxu3 %vm89_vm0, %v269_v35 }
 0x19f   :  { %v164_v47 = vadd.f32 %v850_v36, %v163_v45 }
 0x1a1   :  { %v168_v49 = vsel %vm167_vm7, %v850_v36, %v164_v47 }
 0x1a2   :  { %v173_v51 = vsel %vm170_vm8, %v172_v48, %v168_v49 }
 0x1a3   :  { %v188_v52 = vmul.f32 %v846_v20, %v173_v51 }
 0x1a5   :  { %804 = vmatmul.msk.f32.vlgmr.msra.gmra.mxu2 %vm89_vm0, %v188_v52  ;;  %807 = vmatmul.msk.f32.vlgmr.msrb.gmra.mxu3 %vm89_vm0, %v239_v24 }
 0x1a6   :  { %814 = vmatpush.xpose.msk.msrb.mxu3 %vm89_vm0, %v438_v53  ;;  %818 = vmatpush.xpose.msk.msra.mxu2 %vm89_vm0, %v577_v50 }
 0x1a9   :  { %v575_v56 = vpop.permute.xlu1 %574 }
 0x1ad   :  { %809 = vmatmul.msk.f32.vlgmr.msra.gmra.mxu3 %vm89_vm0, %v267_v26  ;;  %813 = vmatmul.msk.f32.vlgmr.msrb.gmra.mxu2 %vm89_vm0, %v408_v40 }
 0x1ae   :  { %820 = vmatpush.xpose.msk.msra.mxu3 %vm89_vm0, %v605_v54 }
 0x1b5   :  { %815 = vmatmul.msk.f32.vlgmr.msrb.gmra.mxu3 %vm89_vm0, %v436_v55  ;;  %819 = vmatmul.msk.f32.vlgmr.msra.gmra.mxu2 %vm89_vm0, %v575_v56 }
 0x1bd   :  { %821 = vmatmul.msk.f32.vlgmr.msra.gmra.mxu3 %vm89_vm0, %v603_v57 }
 0x220   :  { %v233_v58 = vpop.f32.mrf.mxu3 }
 0x221   :  { %237 = vst.msk [vmem:[#allocation2 + $0x8] sm:$0xff] %vm89_vm0, %v233_v58 }
 0x228   :  { %v210_v59 = vpop.f32.mrf.mxu2  ;;  %v263_v60 = vpop.f32.mrf.mxu3 }
 0x229   :  { %236 = vst.msk [vmem:[#allocation2] sm:$0xff] %vm89_vm0, %v210_v59  ;;  %v294_v61 = vsel %vm89_vm0, %v263_v60, -inf }
 0x22a   :  { %295 = vmax.xlane.f32.xlu1 %v294_v61 }
 0x230   :  { %v291_v62 = vpop.f32.mrf.mxu3  ;;  %v432_v63 = vpop.f32.mrf.mxu2 }
 0x231   :  { %v463_v0 = vsel %vm89_vm0, %v432_v63, -inf  ;;  %v297_v1 = vsel %vm89_vm0, %v291_v62, -inf }
 0x232   :  { %464 = vmax.xlane.f32.xlu2 %v463_v0  ;;  %298 = vmax.xlane.f32.xlu0 %v297_v1 }
 0x238   :  { %v460_v2 = vpop.f32.mrf.mxu3  ;;  %v599_v3 = vpop.f32.mrf.mxu2 }
 0x239   :  { %v466_v4 = vsel %vm89_vm0, %v460_v2, -inf  ;;  %v630_v5 = vsel %vm89_vm0, %v599_v3, -inf }
 0x23a   :  { %467 = vmax.xlane.f32.xlu1 %v466_v4  ;;  %631 = vmax.xlane.f32.xlu0 %v630_v5 }
 0x240   :  { %v627_v6 = vpop.f32.mrf.mxu3 }
 0x241   :  { %v633_v7 = vsel %vm89_vm0, %v627_v6, -inf }
 0x242   :  { %634 = vmax.xlane.f32.xlu2 %v633_v7 }
 0x24e   :  { %511 = vrot.lane.b32.xlu0 %v1082_v18, %s1009_s3 }
 0x25a   :  { %839 = vrot.lane.b32.xlu2 %v838_v8, %s1010_s8 }
 0x29d   :  { %v296_v9 = vpop.xlane.xlu1 %295 }
 0x29e   :  { %v300_v10 = vsub.f32 %v263_v60, %v296_v9 }
 0x2a0   :  { %v302_v11 = vmul.f32 1.442695, %v300_v10 }
 0x2a2   :  { %851 = vpow2.f32 %v302_v11 }
 0x2a5   :  { %v465_v12 = vpop.xlane.xlu2 %464  ;;  %v299_v13 = vpop.xlane.xlu0 %298 }
 0x2a6   :  { %v469_v14 = vsub.f32 %v432_v63, %v465_v12  ;;  %v301_v15 = vsub.f32 %v291_v62, %v299_v13 }
 0x2a8   :  { %v1117_v16 = vpop.eup %851  ;;  %v471_v17 = vmul.f32 1.442695, %v469_v14  ;;  %v304_v19 = vmul.f32 1.442695, %v301_v15 }
 0x2a9   :  { %v306_v20 = vsel %vm89_vm0, %v1117_v16, 0.0 }
 0x2aa   :  { %853 = vpow2.f32 %v471_v17  ;;  %307 = vadd.xlane.f32.xlu1 %v306_v20 }
 0x2ab   :  { %855 = vpow2.f32 %v304_v19 }
 0x2ad   :  { %v468_v21 = vpop.xlane.xlu1 %467  ;;  %v632_v23 = vpop.xlane.xlu0 %631 }
 0x2ae   :  { %v470_v24 = vsub.f32 %v460_v2, %v468_v21  ;;  %v636_v25 = vsub.f32 %v599_v3, %v632_v23 }
 0x2b0   :  { %v1121_v26 = vpop.eup %853  ;;  %v473_v27 = vmul.f32 1.442695, %v470_v24  ;;  %v638_v28 = vmul.f32 1.442695, %v636_v25 }
 0x2b1   :  { %v1123_v29 = vpop.eup %855  ;;  %v475_v30 = vsel %vm89_vm0, %v1121_v26, 0.0 }
 0x2b2   :  { %857 = vpow2.f32 %v473_v27  ;;  %476 = vadd.xlane.f32.xlu2 %v475_v30  ;;  %v309_v31 = vsel %vm89_vm0, %v1123_v29, 0.0 }
 0x2b3   :  { %859 = vpow2.f32 %v638_v28  ;;  %310 = vadd.xlane.f32.xlu0 %v309_v31 }
 0x2b5   :  { %v635_v32 = vpop.xlane.xlu2 %634 }
 0x2b6   :  { %v637_v33 = vsub.f32 %v627_v6, %v635_v32 }
 0x2b8   :  { %v1129_v34 = vpop.eup %857  ;;  %v640_v35 = vmul.f32 1.442695, %v637_v33 }
 0x2b9   :  { %v1131_v36 = vpop.eup %859  ;;  %v478_v37 = vsel %vm89_vm0, %v1129_v34, 0.0 }
 0x2ba   :  { %861 = vpow2.f32 %v640_v35  ;;  %479 = vadd.xlane.f32.xlu1 %v478_v37  ;;  %v642_v38 = vsel %vm89_vm0, %v1131_v36, 0.0 }
 0x2bb   :  { %643 = vadd.xlane.f32.xlu0 %v642_v38 }
 0x2bd   :  { %v840_v39 = vpop.permute.xlu2 %839 }
 0x2be   :  { %v841_v40 = vunpack.i.l.bf16 %v840_v39  ;;  %v842_v41 = vunpack.i.h.bf16 %v840_v39 }
 0x2c0   :  { %v1137_v42 = vpop.eup %861  ;;  %364 = vmatpush.msrb.mxu0 %v841_v40  ;;  %391 = vmatpush.msrb.mxu1 %v842_v41  ;;  %v512_v43 = vpop.permute.xlu0 %511 }
 0x2c1   :  { %v645_v44 = vsel %vm89_vm0, %v1137_v42, 0.0 }
 0x2c2   :  { %532 = vmatpush.msra.mxu0 %v512_v43  ;;  %646 = vadd.xlane.f32.xlu1 %v645_v44 }
 0x2ca   :  { %678 = vrot.lane.b32.xlu2 %v1082_v18, %s1011_s9 }
 0x2cf   :  { %704 = vrot.lane.b32.xlu0 %v1088_v22, %s1011_s9 }
 0x2db   :  { %537 = vrot.lane.b32.xlu1 %v1088_v22, %s1009_s3 }
 0x31d   :  { %v308_v45 = vpop.xlane.xlu1 %307 }
 0x31e   :  { %863 = vrcp.f32 %v308_v45  ;;  %v323_v53 = vand.u32 2147483648, %v308_v45  ;;  %vm317_vm10 = vweird.f32 %v308_v45  ;;  %v321_v54 = vand.u32 2147483647, %v308_v45 }
 0x320   :  { %v324_v61 = vor.u32 1.1754944e-38, %v323_v53  ;;  %vm322_vm12 = vcmp.eq.f32.partialorder %v321_v54, 8.507059e+37 }
 0x324   :  { %v864_v46 = vpop.eup %863 }
 0x325   :  { %v313_v47 = vmul.f32 %v864_v46, %v308_v45  ;;  %v477_v48 = vpop.xlane.xlu2 %476  ;;  %vm318_vm9 = vweird.f32 %v864_v46 }
 0x326   :  { %865 = vrcp.f32 %v477_v48  ;;  %v311_v49 = vpop.xlane.xlu0 %310  ;;  %vm1147_vm11 = vmor %vm317_vm10, %vm318_vm9  ;;  %v492_v63 = vand.u32 2147483648, %v477_v48  ;;  %v490_v2 = vand.u32 2147483647, %v477_v48  ;;  %vm486_vm14 = vweird.f32 %v477_v48 }
 0x327   :  { %v314_v50 = vsub.f32 1.0, %v313_v47  ;;  %867 = vrcp.f32 %v311_v49  ;;  %v337_v8 = vand.u32 2147483648, %v311_v49  ;;  %v335_v12 = vand.u32 2147483647, %v311_v49 }
 0x328   :  { %v493_v10 = vor.u32 1.1754944e-38, %v492_v63  ;;  %vm491_vm2 = vcmp.eq.f32.partialorder %v490_v2, 8.507059e+37  ;;  %vm331_vm3 = vweird.f32 %v311_v49  ;;  %v746_v63 = vld [vmem:[#allocation9 + $0x18] sm:$0xff]  ;;  %v743_v2 = vld [vmem:[#allocation9] sm:$0xff] }
 0x329   :  { %v315_v51 = vmul.f32 %v864_v46, %v314_v50  ;;  %v338_v19 = vor.u32 1.1754944e-38, %v337_v8  ;;  %vm336_vm5 = vcmp.eq.f32.partialorder %v335_v12, 8.507059e+37  ;;  %766 = vmatpush.msrb.mxu2 %v746_v63 }
 0x32b   :  { %v316_v52 = vadd.f32 %v864_v46, %v315_v51 }
 0x32c   :  { %v866_v18 = vpop.eup %865 }
 0x32d   :  { %v868_v55 = vpop.eup %867  ;;  %v482_v22 = vmul.f32 %v866_v18, %v477_v48  ;;  %v1151_v57 = vpop.xlane.xlu1 %479  ;;  %v320_v60 = vsel %vm1147_vm11, %v864_v46, %v316_v52  ;;  %vm487_vm13 = vweird.f32 %v866_v18 }
 0x32e   :  { %v327_v58 = vmul.f32 %v868_v55, %v311_v49  ;;  %869 = vrcp.f32 %v1151_v57  ;;  %v644_v59 = vpop.xlane.xlu0 %643  ;;  %v325_v3 = vsel %vm322_vm12, %v324_v61, %v320_v60  ;;  %v679_v6 = vpop.permute.xlu2 %678  ;;  %vm488_vm15 = vmor %vm486_vm14, %vm487_vm13  ;;  %vm332_vm1 = vweird.f32 %v868_v55 }
 0x32f   :  { %v483_v62 = vsub.f32 1.0, %v482_v22  ;;  %871 = vrcp.f32 %v644_v59  ;;  %v340_v5 = vmul.f32 %v1117_v16, %v325_v3  ;;  %vm333_vm4 = vmor %vm331_vm3, %vm332_vm1  ;;  %v659_v25 = vand.u32 2147483648, %v644_v59 }
 0x330   :  { %v328_v0 = vsub.f32 1.0, %v327_v58  ;;  %v657_v30 = vand.u32 2147483647, %v644_v59  ;;  %vm653_vm7 = vweird.f32 %v644_v59  ;;  %v506_v44 = vand.u32 2147483648, %v1151_v57 }
 0x331   :  { %v484_v1 = vmul.f32 %v866_v18, %v483_v62  ;;  %810 = vmatmul.msk.f32.vlgmr.msrb.gmra.mxu0 %vm89_vm0, %v340_v5  ;;  %v660_v37 = vor.u32 1.1754944e-38, %v659_v25  ;;  %vm500_vm11 = vweird.f32 %v1151_v57  ;;  %v504_v45 = vand.u32 2147483647, %v1151_v57 }
 0x332   :  { %v329_v4 = vmul.f32 %v868_v55, %v328_v0  ;;  %699 = vmatpush.msrb.mxu0 %v679_v6  ;;  %vm658_vm9 = vcmp.eq.f32.partialorder %v657_v30, 8.507059e+37  ;;  %v507_v48 = vor.u32 1.1754944e-38, %v506_v44  ;;  %vm404_vm3 = vcmask 130112   ;;  %v745_v0 = vld [vmem:[#allocation9 + $0x10] sm:$0xff] }
 0x333   :  { %v485_v7 = vadd.f32 %v866_v18, %v484_v1  ;;  %vm505_vm13 = vcmp.eq.f32.partialorder %v504_v45, 8.507059e+37  ;;  %v744_v1 = vld [vmem:[#allocation9 + $0x8] sm:$0xff]  ;;  %767 = vmatpush.msrb.mxu2 %v745_v0 }
 0x334   :  { %v870_v9 = vpop.eup %869  ;;  %v330_v11 = vadd.f32 %v868_v55, %v329_v4 }
 0x335   :  { %v872_v13 = vpop.eup %871  ;;  %v489_v14 = vsel %vm488_vm15, %v866_v18, %v485_v7  ;;  %v647_v15 = vpop.xlane.xlu1 %646  ;;  %v496_v20 = vmul.f32 %v870_v9, %v1151_v57  ;;  %vm501_vm10 = vweird.f32 %v870_v9  ;;  %768 = vmatpush.msrb.mxu2 %v744_v1 }
 0x336   :  { %v494_v17 = vsel %vm491_vm2, %v493_v10, %v489_v14  ;;  %v649_v16 = vmul.f32 %v872_v13, %v644_v59  ;;  %873 = vrcp.f32 %v647_v15  ;;  %v334_v23 = vsel %vm333_vm4, %v868_v55, %v330_v11  ;;  %vm502_vm12 = vmor %vm500_vm11, %vm501_vm10 }
 0x337   :  { %v509_v24 = vmul.f32 %v1121_v26, %v494_v17  ;;  %v339_v27 = vsel %vm336_vm5, %v338_v19, %v334_v23  ;;  %vm654_vm6 = vweird.f32 %v872_v13  ;;  %v497_v32 = vsub.f32 1.0, %v496_v20  ;;  %769 = vmatpush.msrb.mxu2 %v743_v2 }
 0x338   :  { %v650_v21 = vsub.f32 1.0, %v649_v16  ;;  %v341_v31 = vmul.f32 %v1123_v29, %v339_v27  ;;  %vm655_vm8 = vmor %vm653_vm7, %vm654_vm6  ;;  %vm667_vm15 = vweird.f32 %v647_v15  ;;  %v671_v51 = vand.u32 2147483647, %v647_v15 }
 0x339   :  { %816 = vmatmul.msk.f32.vlgmr.msra.gmra.mxu0 %vm89_vm0, %v509_v24  ;;  %v498_v26 = vmul.f32 %v870_v9, %v497_v32  ;;  %vm738_vm4 = vcmask 261312   ;;  %vm747_vm5 = vcmask 261120  }
 0x33a   :  { %v651_v28 = vmul.f32 %v872_v13, %v650_v21  ;;  %811 = vmatmul.msk.f32.vlgmr.msrb.gmra.mxu1 %vm89_vm0, %v341_v31  ;;  %vm672_vm2 = vcmp.eq.f32.partialorder %v671_v51, 8.507059e+37 }
 0x33b   :  { %v499_v43 = vadd.f32 %v870_v9, %v498_v26 }
 0x33c   :  { %v874_v33 = vpop.eup %873  ;;  %v652_v35 = vadd.f32 %v872_v13, %v651_v28 }
 0x33d   :  { %v663_v40 = vmul.f32 %v874_v33, %v647_v15  ;;  %v503_v46 = vsel %vm502_vm12, %v870_v9, %v499_v43  ;;  %vm668_vm14 = vweird.f32 %v874_v33 }
 0x33e   :  { %v656_v38 = vsel %vm655_vm8, %v872_v13, %v652_v35  ;;  %v508_v49 = vsel %vm505_vm13, %v507_v48, %v503_v46  ;;  %vm669_vm1 = vmor %vm667_vm15, %vm668_vm14 }
 0x33f   :  { %v661_v39 = vsel %vm658_vm9, %v660_v37, %v656_v38  ;;  %v664_v29 = vsub.f32 1.0, %v663_v40  ;;  %v510_v53 = vmul.f32 %v1129_v34, %v508_v49 }
 0x340   :  { %v676_v41 = vmul.f32 %v1131_v36, %v661_v39  ;;  %v673_v36 = vand.u32 2147483648, %v647_v15 }
 0x341   :  { %v665_v47 = vmul.f32 %v874_v33, %v664_v29  ;;  %v705_v18 = vpop.permute.xlu0 %704 }
 0x342   :  { %822 = vmatmul.msk.f32.vlgmr.msrb.gmra.mxu0 %vm89_vm0, %v676_v41  ;;  %v674_v55 = vor.u32 1.1754944e-38, %v673_v36 }
 0x343   :  { %v666_v50 = vadd.f32 %v874_v33, %v665_v47 }
 0x345   :  { %v670_v54 = vsel %vm669_vm1, %v874_v33, %v666_v50 }
 0x346   :  { %v675_v56 = vsel %vm672_vm2, %v674_v55, %v670_v54 }
 0x347   :  { %v677_v22 = vmul.f32 %v1137_v42, %v675_v56 }
 0x34d   :  { %v538_v52 = vpop.permute.xlu1 %537 }
 0x34e   :  { %558 = vmatpush.msra.mxu1 %v538_v52 }
 0x34f   :  { %817 = vmatmul.msk.f32.vlgmr.msra.gmra.mxu1 %vm89_vm0, %v510_v53 }
 0x350   :  { %725 = vmatpush.msrb.mxu1 %v705_v18 }
 0x357   :  { %823 = vmatmul.msk.f32.vlgmr.msrb.gmra.mxu1 %vm89_vm0, %v677_v22  ;;  %vm571_vm0 = vcmask 195712  }
 0x3ae   :  { %v366_v57 = vpop.f32.mrf.mxu0 }
 0x3af   :  { %398 = vrot.lane.b32.xlu2 %v366_v57, %s1005_s24 }
 0x3b6   :  { %v534_v59 = vpop.f32.mrf.mxu0 }
 0x3b7   :  { %v393_v58 = vpop.f32.mrf.mxu1  ;;  %565 = vrot.lane.b32.xlu0 %v534_v59, %s1012_s10 }
 0x3b8   :  { %400 = vrot.lane.b32.xlu2 %v393_v58, %s1005_s24 }
 0x3bf   :  { %v701_v34 = vpop.f32.mrf.mxu0 }
 0x3c0   :  { %732 = vrot.lane.b32.xlu1 %v701_v34, %s1013_s11 }
 0x3cc   :  { %v560_v60 = vpop.f32.mrf.mxu1 }
 0x3cd   :  { %567 = vrot.lane.b32.xlu0 %v560_v60, %s1012_s10 }
 0x3d4   :  { %v727_v61 = vpop.f32.mrf.mxu1 }
 0x3d5   :  { %734 = vrot.lane.b32.xlu1 %v727_v61, %s1013_s11 }
 0x409   :  { %v399_v42 = vpop.permute.xlu2 %398 }
 0x40a   :  { %405 = vst.msk [vmem:[#allocation2] sm:$0xff] %vm404_vm3, %v399_v42 }
 0x412   :  { %v401_v62 = vpop.permute.xlu2 %400 }
 0x413   :  { %406 = vst.msk [vmem:[#allocation2 + $0x8] sm:$0xff] %vm404_vm3, %v401_v62 }
 0x429   :  { %v566_v3 = vpop.permute.xlu0 %565 }
 0x42a   :  { %572 = vst.msk [vmem:[#allocation2] sm:$0xff] %vm571_vm0, %v566_v3 }
 0x432   :  { %v733_v4 = vpop.permute.xlu1 %732 }
 0x433   :  { %739 = vst.msk [vmem:[#allocation2] sm:$0xff] %vm738_vm4, %v733_v4 }
 0x43a   :  { %v741_v5 = vld [vmem:[#allocation2] sm:$0xff] }
 0x43b   :  { %824 = vmatmul.msk.f32.vlgmr.msrb.gmra.mxu2 %vm747_vm5, %v741_v5 }
 0x43f   :  { %v568_v6 = vpop.permute.xlu0 %567 }
 0x440   :  { %573 = vst.msk [vmem:[#allocation2 + $0x8] sm:$0xff] %vm571_vm0, %v568_v6 }
 0x447   :  { %v735_v7 = vpop.permute.xlu1 %734 }
 0x448   :  { %740 = vst.msk [vmem:[#allocation2 + $0x8] sm:$0xff] %vm738_vm4, %v735_v7 }
 0x44f   :  { %v742_v8 = vld [vmem:[#allocation2 + $0x8] sm:$0xff] }
 0x450   :  { %825 = vmatmul.msk.f32.gmra.mxu2 %vm747_vm5, %v742_v8 }
 0x4be   :  { %v771_v9 = vpop.f32.mrf.mxu2 }
 0x4bf   :  { %777 = vst.msk [vmem:[#allocation11] sm:$0xff] %vm747_vm5, %v771_v9 }
 0x4d3   :  { %v774_v10 = vpop.f32.mrf.mxu2 }
 0x4d4   :  { %778 = vst.msk [vmem:[#allocation11 + $0x8] sm:$0xff] %vm747_vm5, %v774_v10 }
 0x4d5   :  { %791 = dma.vmem_to_hbm [thread:$0]  %s784_s13, 256, %s786_s16, [#allocation5], %s1004_s23, %s1004_s23, %s1005_s24  }
 0x4d6   :  { %1001 = dma.done.wait [#allocation5], 256  }
 0x4d7   :  { %1002 = vsyncadd [#allocation5], 4294967040 }
 0x4d8   :  { %796 = vsyncpa [#allocation4], 1 }
 0x4d9   :  { %797 = vsyncpa [#allocation7], 1 }
 0x4da   :  { %798 = vsyncpa [#allocation10], 1 }
 0x4db   :  { %799 = vsyncpa [#allocation5], 1 }

// kernel: tpu_custom_call.1
= control target key start
LH: loop header
LB: loop body
LE: loop exit
PB: predicated region body
PF: predicated region fallthrough
CT: control target
= control target key end

     0   :  { %9 = vsyncpa [#allocation4], 0  ;;  %s1184_s0 = inlined_call_operand.hbm [shape: f32[2,8,32], index: 0, kind: input, shape index: {}]   ;;  %s1185_s1 = inlined_call_operand.hbm [shape: f32[2,8,32], index: 1, kind: input, shape index: {}]   ;;  %s1186_s2 = inlined_call_operand.hbm [shape: f32[2,8,32], index: 2, kind: input, shape index: {}]   ;;  %s1187_s3 = inlined_call_operand.hbm [shape: f32[32,32], index: 3, kind: input, shape index: {}]   ;;  %s1188_s4 = inlined_call_operand.hbm [shape: f32[2,8,32], index: 4, kind: output, shape index: {}]  }
   0x1   :  { %10 = vsyncpa [#allocation7], 0 }
   0x2   :  { %11 = vsyncpa [#allocation10], 0 }
   0x3   :  { %12 = vsyncpa [#allocation5], 0  ;;  %s30_s17 = sshll.u32 %s1185_s1, 4  ;;  %s1003_s18 = smov [#allocation6]   ;;  %s31_s17 = int_to_ptr.hbm [resolvable:$true] %s30_s17 }
   0x4   :  { %s32_s19 = sshll.u32 %s1003_s18, 4  ;;  %s17_s22 = sshll.u32 %s1184_s0, 4  ;;  %s33_s19 = int_to_ptr.vmem [resolvable:$true] %s32_s19  ;;  %s18_s22 = int_to_ptr.hbm [resolvable:$true] %s17_s22 }
   0x5   :  { %s1004_s23 = smov 128   ;;  %s1005_s24 = smov 8  }
   0x6   :  { %38 = dma.hbm_to_vmem [thread:$0]  %s31_s17, 256, %s33_s19, [#allocation7], %s1004_s23, %s1004_s23, %s1005_s24  }
   0x7   :  { %s1006_s25 = smov [#allocation3]   ;;  %s43_s1 = sshll.u32 %s1186_s2, 4  ;;  %s44_s1 = int_to_ptr.hbm [resolvable:$true] %s43_s1 }
   0x8   :  { %s19_s26 = sshll.u32 %s1006_s25, 4  ;;  %s56_s30 = sshll.u32 %s1187_s3, 4  ;;  %s20_s26 = int_to_ptr.vmem [resolvable:$true] %s19_s26  ;;  %s57_s30 = int_to_ptr.hbm [resolvable:$true] %s56_s30 }
   0x9   :  { %25 = dma.hbm_to_vmem [thread:$0]  %s18_s22, 256, %s20_s26, [#allocation4], %s1004_s23, %s1004_s23, %s1005_s24  }
   0xa   :  { %s1007_s5 = smov [#allocation8]   ;;  %s1008_s7 = smov [#allocation9]  }
   0xb   :  { %s45_s6 = sshll.u32 %s1007_s5, 4  ;;  %s58_s2 = sshll.u32 %s1008_s7, 4  ;;  %s46_s6 = int_to_ptr.vmem [resolvable:$true] %s45_s6  ;;  %s59_s2 = int_to_ptr.vmem [resolvable:$true] %s58_s2 }
   0xc   :  { %51 = dma.hbm_to_vmem [thread:$0]  %s44_s1, 256, %s46_s6, [#allocation7], %s1004_s23, %s1004_s23, %s1005_s24  }
   0xd   :  { %64 = dma.hbm_to_vmem [thread:$0]  %s57_s30, 512, %s59_s2, [#allocation10], %s1004_s23, %s1004_s23, %s1005_s24  }
   0xe   :  { %995 = dma.done.wait [#allocation4], 256  }
   0xf   :  { %996 = vsyncadd [#allocation4], 4294967040 }
  0x10   :  { %997 = dma.done.wait [#allocation7], 512  }
  0x11   :  { %998 = vsyncadd [#allocation7], 4294966784 }
  0x12   :  { %999 = dma.done.wait [#allocation10], 512  }
  0x13   :  { %1000 = vsyncadd [#allocation10], 4294966784  ;;  %vm89_vm0 = vcmask 64512   ;;  %v86_v0 = vld [vmem:[#allocation6 + $0x8] sm:$0xff]  ;;  %v82_v1 = vld [vmem:[#allocation3 + $0x8] sm:$0xff]  ;;  %s1009_s3 = smov 112  }
  0x14   :  { %v85_v2 = vld [vmem:[#allocation6] sm:$0xff]  ;;  %802 = vmatpush.xpose.msk.msra.mxu1 %vm89_vm0, %v86_v0  ;;  %v84_v3 = vmul.f32 0.35355338, %v82_v1  ;;  %v81_v4 = vld [vmem:[#allocation3] sm:$0xff]  ;;  %s1010_s8 = smov 120   ;;  %s1011_s9 = smov 104  }
  0x15   :  { %800 = vmatpush.xpose.msk.msra.mxu0 %vm89_vm0, %v85_v2  ;;  %v83_v5 = vmul.f32 0.35355338, %v81_v4  ;;  %409 = vrot.lane.b32.xlu1 %v85_v2, %s1009_s3  ;;  %v1082_v18 = vld [vmem:[#allocation8] sm:$0xff]  ;;  %v1088_v22 = vld [vmem:[#allocation8 + $0x8] sm:$0xff]  ;;  %s1012_s10 = smov 16   ;;  %s1013_s11 = smov 24  }
  0x16   :  { %240 = vrot.lane.b32.xlu2 %v85_v2, %s1010_s8  ;;  %208 = vmatpush.msra.mxu2 %v1082_v18  ;;  %s1014_s12 = smov [#allocation11]   ;;  %s785_s16 = sshll.u32 %s1188_s4, 4  ;;  %s786_s16 = int_to_ptr.hbm [resolvable:$true] %s785_s16 }
  0x17   :  { %803 = vmatmul.msk.f32.vlgmr.msra.gmra.mxu1 %vm89_vm0, %v84_v3  ;;  %231 = vmatpush.msra.mxu3 %v1088_v22  ;;  %s783_s13 = sshll.u32 %s1014_s12, 4  ;;  %s784_s13 = int_to_ptr.vmem [resolvable:$true] %s783_s13 }
  0x18   :  { %801 = vmatmul.msk.f32.vlgmr.msra.gmra.mxu0 %vm89_vm0, %v83_v5 }
  0x1e   :  { %238 = vrot.lane.b32.xlu2 %v83_v5, %s1010_s8 }
  0x26   :  { %266 = vrot.lane.b32.xlu2 %v84_v3, %s1010_s8 }
  0x2e   :  { %407 = vrot.lane.b32.xlu2 %v83_v5, %s1009_s3 }
  0x36   :  { %437 = vrot.lane.b32.xlu2 %v86_v0, %s1009_s3 }
  0x3e   :  { %435 = vrot.lane.b32.xlu2 %v84_v3, %s1009_s3 }
  0x46   :  { %602 = vrot.lane.b32.xlu2 %v84_v3, %s1011_s9 }
  0x70   :  { %v241_v23 = vpop.permute.xlu2 %240 }
  0x71   :  { %806 = vmatpush.xpose.msk.msrb.mxu3 %vm89_vm0, %v241_v23 }
  0x78   :  { %v239_v24 = vpop.permute.xlu2 %238 }
  0x80   :  { %v267_v26 = vpop.permute.xlu2 %266 }
  0x87   :  { %v410_v19 = vpop.permute.xlu1 %409 }
  0x88   :  { %812 = vmatpush.xpose.msk.msrb.mxu2 %vm89_vm0, %v410_v19  ;;  %v408_v40 = vpop.permute.xlu2 %407 }
  0x90   :  { %v438_v53 = vpop.permute.xlu2 %437 }
  0x94   :  { %v139_v6 = vpop.f32.mrf.mxu1 }
  0x95   :  { %v145_v7 = vsel %vm89_vm0, %v139_v6, -inf  ;;  %v113_v8 = vpop.f32.mrf.mxu0 }
  0x96   :  { %146 = vmax.xlane.f32.xlu0 %v145_v7  ;;  %v142_v9 = vsel %vm89_vm0, %v113_v8, -inf }
  0x98   :  { %v436_v55 = vpop.permute.xlu2 %435 }
  0x9e   :  { %143 = vmax.xlane.f32.xlu0 %v142_v9 }
  0xa0   :  { %v603_v57 = vpop.permute.xlu2 %602 }
  0xb2   :  { %268 = vrot.lane.b32.xlu0 %v86_v0, %s1010_s8 }
  0xba   :  { %576 = vrot.lane.b32.xlu0 %v85_v2, %s1011_s9 }
  0xc2   :  { %604 = vrot.lane.b32.xlu0 %v86_v0, %s1011_s9 }
 0x109   :  { %v147_v10 = vpop.xlane.xlu0 %146 }
 0x10a   :  { %v149_v11 = vsub.f32 %v139_v6, %v147_v10 }
 0x10c   :  { %v152_v12 = vmul.f32 1.442695, %v149_v11 }
 0x10e   :  { %843 = vpow2.f32 %v152_v12 }
 0x111   :  { %v144_v13 = vpop.xlane.xlu0 %143 }
 0x112   :  { %v148_v14 = vsub.f32 %v113_v8, %v144_v13  ;;  %v838_v8 = vpack.i.bf16 %v1088_v22, %v1082_v18 }
 0x114   :  { %v844_v15 = vpop.eup %843  ;;  %v150_v16 = vmul.f32 1.442695, %v148_v14 }
 0x115   :  { %v157_v17 = vsel %vm89_vm0, %v844_v15, 0.0 }
 0x116   :  { %845 = vpow2.f32 %v150_v16  ;;  %158 = vadd.xlane.f32.xlu1 %v157_v17 }
 0x11c   :  { %v846_v20 = vpop.eup %845 }
 0x11d   :  { %v154_v21 = vsel %vm89_vm0, %v846_v20, 0.0 }
 0x11e   :  { %155 = vadd.xlane.f32.xlu1 %v154_v21 }
 0x124   :  { %v269_v35 = vpop.permute.xlu0 %268 }
 0x12c   :  { %v577_v50 = vpop.permute.xlu0 %576 }
 0x134   :  { %v605_v54 = vpop.permute.xlu0 %604 }
 0x137   :  { %574 = vrot.lane.b32.xlu1 %v83_v5, %s1011_s9 }
 0x189   :  { %v159_v25 = vpop.xlane.xlu1 %158 }
 0x18a   :  { %847 = vrcp.f32 %v159_v25  ;;  %v185_v31 = vand.u32 2147483648, %v159_v25  ;;  %v183_v33 = vand.u32 2147483647, %v159_v25  ;;  %vm179_vm2 = vweird.f32 %v159_v25 }
 0x18c   :  { %v186_v37 = vor.u32 1.1754944e-38, %v185_v31  ;;  %vm184_vm4 = vcmp.eq.f32.partialorder %v183_v33, 8.507059e+37 }
 0x190   :  { %v848_v27 = vpop.eup %847 }
 0x191   :  { %v175_v28 = vmul.f32 %v848_v27, %v159_v25  ;;  %v156_v29 = vpop.xlane.xlu1 %155  ;;  %vm180_vm1 = vweird.f32 %v848_v27 }
 0x192   :  { %849 = vrcp.f32 %v156_v29  ;;  %vm181_vm3 = vmor %vm179_vm2, %vm180_vm1  ;;  %v171_v44 = vand.u32 2147483648, %v156_v29  ;;  %v169_v46 = vand.u32 2147483647, %v156_v29  ;;  %vm165_vm6 = vweird.f32 %v156_v29 }
 0x193   :  { %v176_v30 = vsub.f32 1.0, %v175_v28 }
 0x194   :  { %v172_v48 = vor.u32 1.1754944e-38, %v171_v44  ;;  %vm170_vm8 = vcmp.eq.f32.partialorder %v169_v46, 8.507059e+37 }
 0x195   :  { %v177_v32 = vmul.f32 %v848_v27, %v176_v30 }
 0x197   :  { %v178_v34 = vadd.f32 %v848_v27, %v177_v32 }
 0x198   :  { %v850_v36 = vpop.eup %849 }
 0x199   :  { %v161_v38 = vmul.f32 %v850_v36, %v156_v29  ;;  %v182_v39 = vsel %vm181_vm3, %v848_v27, %v178_v34  ;;  %vm166_vm5 = vweird.f32 %v850_v36 }
 0x19a   :  { %v187_v41 = vsel %vm184_vm4, %v186_v37, %v182_v39  ;;  %vm167_vm7 = vmor %vm165_vm6, %vm166_vm5 }
 0x19b   :  { %v162_v42 = vsub.f32 1.0, %v161_v38  ;;  %v189_v43 = vmul.f32 %v844_v15, %v187_v41 }
 0x19d   :  { %v163_v45 = vmul.f32 %v850_v36, %v162_v42  ;;  %805 = vmatmul.msk.f32.vlgmr.msra.gmra.mxu3 %vm89_vm0, %v189_v43 }
 0x19e   :  { %808 = vmatpush.xpose.msk.msra.mxu3 %vm89_vm0, %v269_v35 }
 0x19f   :  { %v164_v47 = vadd.f32 %v850_v36, %v163_v45 }
 0x1a1   :  { %v168_v49 = vsel %vm167_vm7, %v850_v36, %v164_v47 }
 0x1a2   :  { %v173_v51 = vsel %vm170_vm8, %v172_v48, %v168_v49 }
 0x1a3   :  { %v188_v52 = vmul.f32 %v846_v20, %v173_v51 }
 0x1a5   :  { %804 = vmatmul.msk.f32.vlgmr.msra.gmra.mxu2 %vm89_vm0, %v188_v52  ;;  %807 = vmatmul.msk.f32.vlgmr.msrb.gmra.mxu3 %vm89_vm0, %v239_v24 }
 0x1a6   :  { %814 = vmatpush.xpose.msk.msrb.mxu3 %vm89_vm0, %v438_v53  ;;  %818 = vmatpush.xpose.msk.msra.mxu2 %vm89_vm0, %v577_v50 }
 0x1a9   :  { %v575_v56 = vpop.permute.xlu1 %574 }
 0x1ad   :  { %809 = vmatmul.msk.f32.vlgmr.msra.gmra.mxu3 %vm89_vm0, %v267_v26  ;;  %813 = vmatmul.msk.f32.vlgmr.msrb.gmra.mxu2 %vm89_vm0, %v408_v40 }
 0x1ae   :  { %820 = vmatpush.xpose.msk.msra.mxu3 %vm89_vm0, %v605_v54 }
 0x1b5   :  { %815 = vmatmul.msk.f32.vlgmr.msrb.gmra.mxu3 %vm89_vm0, %v436_v55  ;;  %819 = vmatmul.msk.f32.vlgmr.msra.gmra.mxu2 %vm89_vm0, %v575_v56 }
 0x1bd   :  { %821 = vmatmul.msk.f32.vlgmr.msra.gmra.mxu3 %vm89_vm0, %v603_v57 }
 0x220   :  { %v233_v58 = vpop.f32.mrf.mxu3 }
 0x221   :  { %237 = vst.msk [vmem:[#allocation2 + $0x8] sm:$0xff] %vm89_vm0, %v233_v58 }
 0x228   :  { %v210_v59 = vpop.f32.mrf.mxu2  ;;  %v263_v60 = vpop.f32.mrf.mxu3 }
 0x229   :  { %236 = vst.msk [vmem:[#allocation2] sm:$0xff] %vm89_vm0, %v210_v59  ;;  %v294_v61 = vsel %vm89_vm0, %v263_v60, -inf }
 0x22a   :  { %295 = vmax.xlane.f32.xlu1 %v294_v61 }
 0x230   :  { %v291_v62 = vpop.f32.mrf.mxu3  ;;  %v432_v63 = vpop.f32.mrf.mxu2 }
 0x231   :  { %v463_v0 = vsel %vm89_vm0, %v432_v63, -inf  ;;  %v297_v1 = vsel %vm89_vm0, %v291_v62, -inf }
 0x232   :  { %464 = vmax.xlane.f32.xlu2 %v463_v0  ;;  %298 = vmax.xlane.f32.xlu0 %v297_v1 }
 0x238   :  { %v460_v2 = vpop.f32.mrf.mxu3  ;;  %v599_v3 = vpop.f32.mrf.mxu2 }
 0x239   :  { %v466_v4 = vsel %vm89_vm0, %v460_v2, -inf  ;;  %v630_v5 = vsel %vm89_vm0, %v599_v3, -inf }
 0x23a   :  { %467 = vmax.xlane.f32.xlu1 %v466_v4  ;;  %631 = vmax.xlane.f32.xlu0 %v630_v5 }
 0x240   :  { %v627_v6 = vpop.f32.mrf.mxu3 }
 0x241   :  { %v633_v7 = vsel %vm89_vm0, %v627_v6, -inf }
 0x242   :  { %634 = vmax.xlane.f32.xlu2 %v633_v7 }
 0x24e   :  { %511 = vrot.lane.b32.xlu0 %v1082_v18, %s1009_s3 }
 0x25a   :  { %839 = vrot.lane.b32.xlu2 %v838_v8, %s1010_s8 }
 0x29d   :  { %v296_v9 = vpop.xlane.xlu1 %295 }
 0x29e   :  { %v300_v10 = vsub.f32 %v263_v60, %v296_v9 }
 0x2a0   :  { %v302_v11 = vmul.f32 1.442695, %v300_v10 }
 0x2a2   :  { %851 = vpow2.f32 %v302_v11 }
 0x2a5   :  { %v465_v12 = vpop.xlane.xlu2 %464  ;;  %v299_v13 = vpop.xlane.xlu0 %298 }
 0x2a6   :  { %v469_v14 = vsub.f32 %v432_v63, %v465_v12  ;;  %v301_v15 = vsub.f32 %v291_v62, %v299_v13 }
 0x2a8   :  { %v1117_v16 = vpop.eup %851  ;;  %v471_v17 = vmul.f32 1.442695, %v469_v14  ;;  %v304_v19 = vmul.f32 1.442695, %v301_v15 }
 0x2a9   :  { %v306_v20 = vsel %vm89_vm0, %v1117_v16, 0.0 }
 0x2aa   :  { %853 = vpow2.f32 %v471_v17  ;;  %307 = vadd.xlane.f32.xlu1 %v306_v20 }
 0x2ab   :  { %855 = vpow2.f32 %v304_v19 }
 0x2ad   :  { %v468_v21 = vpop.xlane.xlu1 %467  ;;  %v632_v23 = vpop.xlane.xlu0 %631 }
 0x2ae   :  { %v470_v24 = vsub.f32 %v460_v2, %v468_v21  ;;  %v636_v25 = vsub.f32 %v599_v3, %v632_v23 }
 0x2b0   :  { %v1121_v26 = vpop.eup %853  ;;  %v473_v27 = vmul.f32 1.442695, %v470_v24  ;;  %v638_v28 = vmul.f32 1.442695, %v636_v25 }
 0x2b1   :  { %v1123_v29 = vpop.eup %855  ;;  %v475_v30 = vsel %vm89_vm0, %v1121_v26, 0.0 }
 0x2b2   :  { %857 = vpow2.f32 %v473_v27  ;;  %476 = vadd.xlane.f32.xlu2 %v475_v30  ;;  %v309_v31 = vsel %vm89_vm0, %v1123_v29, 0.0 }
 0x2b3   :  { %859 = vpow2.f32 %v638_v28  ;;  %310 = vadd.xlane.f32.xlu0 %v309_v31 }
 0x2b5   :  { %v635_v32 = vpop.xlane.xlu2 %634 }
 0x2b6   :  { %v637_v33 = vsub.f32 %v627_v6, %v635_v32 }
 0x2b8   :  { %v1129_v34 = vpop.eup %857  ;;  %v640_v35 = vmul.f32 1.442695, %v637_v33 }
 0x2b9   :  { %v1131_v36 = vpop.eup %859  ;;  %v478_v37 = vsel %vm89_vm0, %v1129_v34, 0.0 }
 0x2ba   :  { %861 = vpow2.f32 %v640_v35  ;;  %479 = vadd.xlane.f32.xlu1 %v478_v37  ;;  %v642_v38 = vsel %vm89_vm0, %v1131_v36, 0.0 }
 0x2bb   :  { %643 = vadd.xlane.f32.xlu0 %v642_v38 }
 0x2bd   :  { %v840_v39 = vpop.permute.xlu2 %839 }
 0x2be   :  { %v841_v40 = vunpack.i.l.bf16 %v840_v39  ;;  %v842_v41 = vunpack.i.h.bf16 %v840_v39 }
 0x2c0   :  { %v1137_v42 = vpop.eup %861  ;;  %364 = vmatpush.msrb.mxu0 %v841_v40  ;;  %391 = vmatpush.msrb.mxu1 %v842_v41  ;;  %v512_v43 = vpop.permute.xlu0 %511 }
 0x2c1   :  { %v645_v44 = vsel %vm89_vm0, %v1137_v42, 0.0 }
 0x2c2   :  { %532 = vmatpush.msra.mxu0 %v512_v43  ;;  %646 = vadd.xlane.f32.xlu1 %v645_v44 }
 0x2ca   :  { %678 = vrot.lane.b32.xlu2 %v1082_v18, %s1011_s9 }
 0x2cf   :  { %704 = vrot.lane.b32.xlu0 %v1088_v22, %s1011_s9 }
 0x2db   :  { %537 = vrot.lane.b32.xlu1 %v1088_v22, %s1009_s3 }
 0x31d   :  { %v308_v45 = vpop.xlane.xlu1 %307 }
 0x31e   :  { %863 = vrcp.f32 %v308_v45  ;;  %v323_v53 = vand.u32 2147483648, %v308_v45  ;;  %vm317_vm10 = vweird.f32 %v308_v45  ;;  %v321_v54 = vand.u32 2147483647, %v308_v45 }
 0x320   :  { %v324_v61 = vor.u32 1.1754944e-38, %v323_v53  ;;  %vm322_vm12 = vcmp.eq.f32.partialorder %v321_v54, 8.507059e+37 }
 0x324   :  { %v864_v46 = vpop.eup %863 }
 0x325   :  { %v313_v47 = vmul.f32 %v864_v46, %v308_v45  ;;  %v477_v48 = vpop.xlane.xlu2 %476  ;;  %vm318_vm9 = vweird.f32 %v864_v46 }
 0x326   :  { %865 = vrcp.f32 %v477_v48  ;;  %v311_v49 = vpop.xlane.xlu0 %310  ;;  %vm1147_vm11 = vmor %vm317_vm10, %vm318_vm9  ;;  %v492_v63 = vand.u32 2147483648, %v477_v48  ;;  %v490_v2 = vand.u32 2147483647, %v477_v48  ;;  %vm486_vm14 = vweird.f32 %v477_v48 }
 0x327   :  { %v314_v50 = vsub.f32 1.0, %v313_v47  ;;  %867 = vrcp.f32 %v311_v49  ;;  %v337_v8 = vand.u32 2147483648, %v311_v49  ;;  %v335_v12 = vand.u32 2147483647, %v311_v49 }
 0x328   :  { %v493_v10 = vor.u32 1.1754944e-38, %v492_v63  ;;  %vm491_vm2 = vcmp.eq.f32.partialorder %v490_v2, 8.507059e+37  ;;  %vm331_vm3 = vweird.f32 %v311_v49  ;;  %v746_v63 = vld [vmem:[#allocation9 + $0x18] sm:$0xff]  ;;  %v743_v2 = vld [vmem:[#allocation9] sm:$0xff] }
 0x329   :  { %v315_v51 = vmul.f32 %v864_v46, %v314_v50  ;;  %v338_v19 = vor.u32 1.1754944e-38, %v337_v8  ;;  %vm336_vm5 = vcmp.eq.f32.partialorder %v335_v12, 8.507059e+37  ;;  %766 = vmatpush.msrb.mxu2 %v746_v63 }
 0x32b   :  { %v316_v52 = vadd.f32 %v864_v46, %v315_v51 }
 0x32c   :  { %v866_v18 = vpop.eup %865 }
 0x32d   :  { %v868_v55 = vpop.eup %867  ;;  %v482_v22 = vmul.f32 %v866_v18, %v477_v48  ;;  %v1151_v57 = vpop.xlane.xlu1 %479  ;;  %v320_v60 = vsel %vm1147_vm11, %v864_v46, %v316_v52  ;;  %vm487_vm13 = vweird.f32 %v866_v18 }
 0x32e   :  { %v327_v58 = vmul.f32 %v868_v55, %v311_v49  ;;  %869 = vrcp.f32 %v1151_v57  ;;  %v644_v59 = vpop.xlane.xlu0 %643  ;;  %v325_v3 = vsel %vm322_vm12, %v324_v61, %v320_v60  ;;  %v679_v6 = vpop.permute.xlu2 %678  ;;  %vm488_vm15 = vmor %vm486_vm14, %vm487_vm13  ;;  %vm332_vm1 = vweird.f32 %v868_v55 }
 0x32f   :  { %v483_v62 = vsub.f32 1.0, %v482_v22  ;;  %871 = vrcp.f32 %v644_v59  ;;  %v340_v5 = vmul.f32 %v1117_v16, %v325_v3  ;;  %vm333_vm4 = vmor %vm331_vm3, %vm332_vm1  ;;  %v659_v25 = vand.u32 2147483648, %v644_v59 }
 0x330   :  { %v328_v0 = vsub.f32 1.0, %v327_v58  ;;  %v657_v30 = vand.u32 2147483647, %v644_v59  ;;  %vm653_vm7 = vweird.f32 %v644_v59  ;;  %v506_v44 = vand.u32 2147483648, %v1151_v57 }
 0x331   :  { %v484_v1 = vmul.f32 %v866_v18, %v483_v62  ;;  %810 = vmatmul.msk.f32.vlgmr.msrb.gmra.mxu0 %vm89_vm0, %v340_v5  ;;  %v660_v37 = vor.u32 1.1754944e-38, %v659_v25  ;;  %vm500_vm11 = vweird.f32 %v1151_v57  ;;  %v504_v45 = vand.u32 2147483647, %v1151_v57 }
 0x332   :  { %v329_v4 = vmul.f32 %v868_v55, %v328_v0  ;;  %699 = vmatpush.msrb.mxu0 %v679_v6  ;;  %vm658_vm9 = vcmp.eq.f32.partialorder %v657_v30, 8.507059e+37  ;;  %v507_v48 = vor.u32 1.1754944e-38, %v506_v44  ;;  %vm404_vm3 = vcmask 130112   ;;  %v745_v0 = vld [vmem:[#allocation9 + $0x10] sm:$0xff] }
 0x333   :  { %v485_v7 = vadd.f32 %v866_v18, %v484_v1  ;;  %vm505_vm13 = vcmp.eq.f32.partialorder %v504_v45, 8.507059e+37  ;;  %v744_v1 = vld [vmem:[#allocation9 + $0x8] sm:$0xff]  ;;  %767 = vmatpush.msrb.mxu2 %v745_v0 }
 0x334   :  { %v870_v9 = vpop.eup %869  ;;  %v330_v11 = vadd.f32 %v868_v55, %v329_v4 }
 0x335   :  { %v872_v13 = vpop.eup %871  ;;  %v489_v14 = vsel %vm488_vm15, %v866_v18, %v485_v7  ;;  %v647_v15 = vpop.xlane.xlu1 %646  ;;  %v496_v20 = vmul.f32 %v870_v9, %v1151_v57  ;;  %vm501_vm10 = vweird.f32 %v870_v9  ;;  %768 = vmatpush.msrb.mxu2 %v744_v1 }
 0x336   :  { %v494_v17 = vsel %vm491_vm2, %v493_v10, %v489_v14  ;;  %v649_v16 = vmul.f32 %v872_v13, %v644_v59  ;;  %873 = vrcp.f32 %v647_v15  ;;  %v334_v23 = vsel %vm333_vm4, %v868_v55, %v330_v11  ;;  %vm502_vm12 = vmor %vm500_vm11, %vm501_vm10 }
 0x337   :  { %v509_v24 = vmul.f32 %v1121_v26, %v494_v17  ;;  %v339_v27 = vsel %vm336_vm5, %v338_v19, %v334_v23  ;;  %vm654_vm6 = vweird.f32 %v872_v13  ;;  %v497_v32 = vsub.f32 1.0, %v496_v20  ;;  %769 = vmatpush.msrb.mxu2 %v743_v2 }
 0x338   :  { %v650_v21 = vsub.f32 1.0, %v649_v16  ;;  %v341_v31 = vmul.f32 %v1123_v29, %v339_v27  ;;  %vm655_vm8 = vmor %vm653_vm7, %vm654_vm6  ;;  %vm667_vm15 = vweird.f32 %v647_v15  ;;  %v671_v51 = vand.u32 2147483647, %v647_v15 }
 0x339   :  { %816 = vmatmul.msk.f32.vlgmr.msra.gmra.mxu0 %vm89_vm0, %v509_v24  ;;  %v498_v26 = vmul.f32 %v870_v9, %v497_v32  ;;  %vm738_vm4 = vcmask 261312   ;;  %vm747_vm5 = vcmask 261120  }
 0x33a   :  { %v651_v28 = vmul.f32 %v872_v13, %v650_v21  ;;  %811 = vmatmul.msk.f32.vlgmr.msrb.gmra.mxu1 %vm89_vm0, %v341_v31  ;;  %vm672_vm2 = vcmp.eq.f32.partialorder %v671_v51, 8.507059e+37 }
 0x33b   :  { %v499_v43 = vadd.f32 %v870_v9, %v498_v26 }
 0x33c   :  { %v874_v33 = vpop.eup %873  ;;  %v652_v35 = vadd.f32 %v872_v13, %v651_v28 }
 0x33d   :  { %v663_v40 = vmul.f32 %v874_v33, %v647_v15  ;;  %v503_v46 = vsel %vm502_vm12, %v870_v9, %v499_v43  ;;  %vm668_vm14 = vweird.f32 %v874_v33 }
 0x33e   :  { %v656_v38 = vsel %vm655_vm8, %v872_v13, %v652_v35  ;;  %v508_v49 = vsel %vm505_vm13, %v507_v48, %v503_v46  ;;  %vm669_vm1 = vmor %vm667_vm15, %vm668_vm14 }
 0x33f   :  { %v661_v39 = vsel %vm658_vm9, %v660_v37, %v656_v38  ;;  %v664_v29 = vsub.f32 1.0, %v663_v40  ;;  %v510_v53 = vmul.f32 %v1129_v34, %v508_v49 }
 0x340   :  { %v676_v41 = vmul.f32 %v1131_v36, %v661_v39  ;;  %v673_v36 = vand.u32 2147483648, %v647_v15 }
 0x341   :  { %v665_v47 = vmul.f32 %v874_v33, %v664_v29  ;;  %v705_v18 = vpop.permute.xlu0 %704 }
 0x342   :  { %822 = vmatmul.msk.f32.vlgmr.msrb.gmra.mxu0 %vm89_vm0, %v676_v41  ;;  %v674_v55 = vor.u32 1.1754944e-38, %v673_v36 }
 0x343   :  { %v666_v50 = vadd.f32 %v874_v33, %v665_v47 }
 0x345   :  { %v670_v54 = vsel %vm669_vm1, %v874_v33, %v666_v50 }
 0x346   :  { %v675_v56 = vsel %vm672_vm2, %v674_v55, %v670_v54 }
 0x347   :  { %v677_v22 = vmul.f32 %v1137_v42, %v675_v56 }
 0x34d   :  { %v538_v52 = vpop.permute.xlu1 %537 }
 0x34e   :  { %558 = vmatpush.msra.mxu1 %v538_v52 }
 0x34f   :  { %817 = vmatmul.msk.f32.vlgmr.msra.gmra.mxu1 %vm89_vm0, %v510_v53 }
 0x350   :  { %725 = vmatpush.msrb.mxu1 %v705_v18 }
 0x357   :  { %823 = vmatmul.msk.f32.vlgmr.msrb.gmra.mxu1 %vm89_vm0, %v677_v22  ;;  %vm571_vm0 = vcmask 195712  }
 0x3ae   :  { %v366_v57 = vpop.f32.mrf.mxu0 }
 0x3af   :  { %398 = vrot.lane.b32.xlu2 %v366_v57, %s1005_s24 }
 0x3b6   :  { %v534_v59 = vpop.f32.mrf.mxu0 }
 0x3b7   :  { %v393_v58 = vpop.f32.mrf.mxu1  ;;  %565 = vrot.lane.b32.xlu0 %v534_v59, %s1012_s10 }
 0x3b8   :  { %400 = vrot.lane.b32.xlu2 %v393_v58, %s1005_s24 }
 0x3bf   :  { %v701_v34 = vpop.f32.mrf.mxu0 }
 0x3c0   :  { %732 = vrot.lane.b32.xlu1 %v701_v34, %s1013_s11 }
 0x3cc   :  { %v560_v60 = vpop.f32.mrf.mxu1 }
 0x3cd   :  { %567 = vrot.lane.b32.xlu0 %v560_v60, %s1012_s10 }
 0x3d4   :  { %v727_v61 = vpop.f32.mrf.mxu1 }
 0x3d5   :  { %734 = vrot.lane.b32.xlu1 %v727_v61, %s1013_s11 }
 0x409   :  { %v399_v42 = vpop.permute.xlu2 %398 }
 0x40a   :  { %405 = vst.msk [vmem:[#allocation2] sm:$0xff] %vm404_vm3, %v399_v42 }
 0x412   :  { %v401_v62 = vpop.permute.xlu2 %400 }
 0x413   :  { %406 = vst.msk [vmem:[#allocation2 + $0x8] sm:$0xff] %vm404_vm3, %v401_v62 }
 0x429   :  { %v566_v3 = vpop.permute.xlu0 %565 }
 0x42a   :  { %572 = vst.msk [vmem:[#allocation2] sm:$0xff] %vm571_vm0, %v566_v3 }
 0x432   :  { %v733_v4 = vpop.permute.xlu1 %732 }
 0x433   :  { %739 = vst.msk [vmem:[#allocation2] sm:$0xff] %vm738_vm4, %v733_v4 }
 0x43a   :  { %v741_v5 = vld [vmem:[#allocation2] sm:$0xff] }
 0x43b   :  { %824 = vmatmul.msk.f32.vlgmr.msrb.gmra.mxu2 %vm747_vm5, %v741_v5 }
 0x43f   :  { %v568_v6 = vpop.permute.xlu0 %567 }
 0x440   :  { %573 = vst.msk [vmem:[#allocation2 + $0x8] sm:$0xff] %vm571_vm0, %v568_v6 }
 0x447   :  { %v735_v7 = vpop.permute.xlu1 %734 }
 0x448   :  { %740 = vst.msk [vmem:[#allocation2 + $0x8] sm:$0xff] %vm738_vm4, %v735_v7 }
 0x44f   :  { %v742_v8 = vld [vmem:[#allocation2 + $0x8] sm:$0xff] }
 0x450   :  { %825 = vmatmul.msk.f32.gmra.mxu2 %vm747_vm5, %v742_v8 }
 0x4be   :  { %v771_v9 = vpop.f32.mrf.mxu2 }
 0x4bf   :  { %777 = vst.msk [vmem:[#allocation11] sm:$0xff] %vm747_vm5, %v771_v9 }
 0x4d3   :  { %v774_v10 = vpop.f32.mrf.mxu2 }
 0x4d4   :  { %778 = vst.msk [vmem:[#allocation11 + $0x8] sm:$0xff] %vm747_vm5, %v774_v10 }
 0x4d5   :  { %791 = dma.vmem_to_hbm [thread:$0]  %s784_s13, 256, %s786_s16, [#allocation5], %s1004_s23, %s1004_s23, %s1005_s24  }
 0x4d6   :  { %1001 = dma.done.wait [#allocation5], 256  }
 0x4d7   :  { %1002 = vsyncadd [#allocation5], 4294967040 }
 0x4d8   :  { %796 = vsyncpa [#allocation4], 1 }
 0x4d9   :  { %797 = vsyncpa [#allocation7], 1 }
 0x4da   :  { %798 = vsyncpa [#allocation10], 1 }
 0x4db   :  { %799 = vsyncpa [#allocation5], 1 }

</bundles_post_ra>
